<compile_context>
chip_gen: v7x
topology: tpu7x:2x2x1
jax: 0.10.0
libtpu: 0.0.40
codegen_flags: <defaults>
</compile_context>

<pallas_src>
import math
import functools

import jax
import jax.numpy as jnp
from jax.experimental import pallas as pl
from jax.experimental.pallas import tpu as pltpu


def _bert_xattn_kernel(hid_ref, ctx_ref, mask_ref,
                       wq_ref, wkv_ref, wo_ref, vecs_ref,
                       out_ref, scores_ref,
                       kh_ref, vh_ref,
                       *, num_heads, head_size, ln_eps):
    H = num_heads * head_size
    scale = 1.0 / math.sqrt(head_size)
    compute_dtype = hid_ref.dtype          # bf16 activations -> bf16 MXU operands

    vecs = vecs_ref[...]                   # (8, H): bq, bk, bv, bo, gamma, beta, 0, 0
    bq, bk, bv, bo = vecs[0:1], vecs[1:2], vecs[2:3], vecs[3:4]
    gamma, beta = vecs[4:5], vecs[5:6]

    # ---- K/V projection: once per batch (q-tile axis is "arbitrary") ----------
    @pl.when(pl.program_id(1) == 0)
    def _():
        ctx = ctx_ref[0]                                       # (Sk, Cd)
        Sk = ctx.shape[0]
        kv = jnp.dot(ctx, wkv_ref[...],
                     preferred_element_type=jnp.float32)       # (Sk, 2H) f32 acc
        k = (kv[:, :H] + bk).astype(compute_dtype)
        v = (kv[:, H:] + bv).astype(compute_dtype)
        # Head-major layout done once per batch; reused by every q tile.
        kh_ref[...] = k.reshape(Sk, num_heads, head_size).transpose(1, 0, 2)
        vh_ref[...] = v.reshape(Sk, num_heads, head_size).transpose(1, 0, 2)

    hid = hid_ref[0]                        # (tq, H)
    mask = mask_ref[0]                      # (1, Sk) -> broadcasts over (nH, tq, Sk)
    tq = hid.shape[0]

    # ---- Q projection (scale folded in), f32 accumulation ---------------------
    q = (jnp.dot(hid, wq_ref[...], preferred_element_type=jnp.float32) + bq) * scale
    qh = q.astype(compute_dtype).reshape(tq, num_heads, head_size).transpose(1, 0, 2)

    # ---- head-batched attention (no per-head Python loop) ---------------------
    sc = jnp.einsum('hqd,hkd->hqk', qh, kh_ref[...],
                    preferred_element_type=jnp.float32)        # (nH, tq, Sk) f32
    sc = sc + mask                                             # additive mask
    scores_ref[0] = sc.astype(scores_ref.dtype)                # one bulk store

    # softmax over Sk in f32; EUP reciprocal + one Newton step (~f32 exact)
    m = jnp.max(sc, axis=-1, keepdims=True)
    e = jnp.exp(sc - m)
    denom = jnp.sum(e, axis=-1, keepdims=True)
    r = pl.reciprocal(denom, approx=True)
    r = r * (2.0 - denom * r)
    p = (e * r).astype(compute_dtype)
    # TODO(synk): attention-prob dropout skipped (eval-mode identity).

    ctx_h = jnp.einsum('hqk,hkd->hqd', p, vh_ref[...],
                       preferred_element_type=jnp.float32)     # (nH, tq, dh)
    ctx_layer = ctx_h.transpose(1, 0, 2).reshape(tq, H).astype(compute_dtype)

    # ---- output dense + residual + LayerNorm (two-pass variance) --------------
    proj = jnp.dot(ctx_layer, wo_ref[...],
                   preferred_element_type=jnp.float32) + bo
    res = proj + hid.astype(jnp.float32)
    mean = jnp.mean(res, axis=-1, keepdims=True)
    cen = res - mean
    var = jnp.mean(cen * cen, axis=-1, keepdims=True)
    normed = cen * jax.lax.rsqrt(var + ln_eps)
    out_ref[0] = (normed * gamma + beta).astype(out_ref.dtype)
    # TODO(synk): hidden_dropout_prob skipped (eval-mode identity).


def _choose_q_tile(Sq, dtype, max_tile=128):
    """Largest divisor of Sq <= max_tile that respects sublane packing."""
    step = 16 if jnp.dtype(dtype).itemsize < 4 else 8   # bf16 packs (16,128) tiles
    if Sq <= max_tile:
        return Sq
    start = max_tile - (max_tile % step)
    for cand in range(start, step - 1, -step):
        if Sq % cand == 0:
            return cand
    # TODO(synk): pad + mask ragged Sq instead of falling back to full Sq.
    return Sq


def bert_x_attention(hidden_states, ctx_tensor, ctx_att_mask, params,
                     *, num_heads, ln_eps=1e-12, q_tile=128,
                     vmem_limit_bytes=40 * 1024 * 1024):
    B, Sq, H = hidden_states.shape
    _, Sk, Cd = ctx_tensor.shape
    head_size = H // num_heads
    act_dtype = hidden_states.dtype

    tq = _choose_q_tile(Sq, act_dtype, q_tile)
    n_q = Sq // tq

    # torch-style broadcastable mask [B,1,1,Sk] -> [B,1,Sk]; kept f32 for softmax.
    mask3d = jnp.reshape(ctx_att_mask, (B, 1, Sk)).astype(jnp.float32)

    # Fused K/V weight (Cd, 2H): one ctx matmul, one weight DMA / VMEM buffer.
    wkv = jnp.concatenate([params["wk"], params["wv"]], axis=1)

    # Pack the six (1, H) vectors into one sublane-aligned (8, H) slab.
    vecs = jnp.concatenate(
        [params["bq"], params["bk"], params["bv"], params["bo"],
         params["ln_g"], params["ln_b"],
         jnp.zeros((2, H), params["bq"].dtype)], axis=0)

    kernel = functools.partial(_bert_xattn_kernel,
                               num_heads=num_heads,
                               head_size=head_size,
                               ln_eps=ln_eps)

    const2d = lambda b, q: (0, 0)
    single = pl.Buffered(1)   # constant-index operands: double-buffering buys nothing

    out_shapes = (
        jax.ShapeDtypeStruct((B, Sq, H), act_dtype),
        # Scores follow the activation dtype (matches the torch module); for bf16
        # activations this halves the dominant scores HBM writeback.
        jax.ShapeDtypeStruct((B, num_heads, Sq, Sk), act_dtype),
    )

    itemsize = jnp.dtype(act_dtype).itemsize
    flops = 2 * B * (Sq * H * H + Sk * Cd * 2 * H
                     + 2 * num_heads * Sq * Sk * head_size + Sq * H * H)
    bytes_accessed = itemsize * (hidden_states.size + ctx_tensor.size
                                 + params["wq"].size + wkv.size
                                 + params["wo"].size + vecs.size
                                 + B * Sq * H + B * num_heads * Sq * Sk) \
                     + 4 * mask3d.size
    cost = pl.CostEstimate(flops=flops,
                           transcendentals=B * num_heads * Sq * Sk,
                           bytes_accessed=bytes_accessed)

    return pl.pallas_call(
        kernel,
        out_shape=out_shapes,
        grid_spec=pltpu.PrefetchScalarGridSpec(
            num_scalar_prefetch=0,
            grid=(B, n_q),
            in_specs=[
                pl.BlockSpec((1, tq, H), lambda b, q: (b, q, 0)),    # hidden_states
                pl.BlockSpec((1, Sk, Cd), lambda b, q: (b, 0, 0)),   # ctx_tensor
                pl.BlockSpec((1, 1, Sk), lambda b, q: (b, 0, 0)),    # mask
                pl.BlockSpec((H, H), const2d, pipeline_mode=single),       # Wq
                pl.BlockSpec((Cd, 2 * H), const2d, pipeline_mode=single),  # Wkv
                pl.BlockSpec((H, H), const2d, pipeline_mode=single),       # Wo
                pl.BlockSpec((8, H), const2d, pipeline_mode=single),       # biases/LN
            ],
            out_specs=[
                pl.BlockSpec((1, tq, H), lambda b, q: (b, q, 0)),
                pl.BlockSpec((1, num_heads, tq, Sk), lambda b, q: (b, 0, q, 0)),
            ],
            scratch_shapes=[
                pltpu.VMEM((num_heads, Sk, head_size), act_dtype),   # K (head-major)
                pltpu.VMEM((num_heads, Sk, head_size), act_dtype),   # V (head-major)
            ]),
        compiler_params=pltpu.CompilerParams(
            # q axis "arbitrary": K/V scratch computed at q==0 is reused across
            # the remaining q tiles of the same batch; batch axis shards cores.
            dimension_semantics=("parallel", "arbitrary"),
            vmem_limit_bytes=vmem_limit_bytes),
        cost_estimate=cost,
    )(hidden_states, ctx_tensor, mask3d,
      params["wq"], wkv, params["wo"], vecs)


def _reference(hidden_states, ctx_tensor, ctx_att_mask, params,
               *, num_heads, ln_eps=1e-12):
    """Pure-JAX reference mirroring the PyTorch module (eval mode)."""
    B, Sq, H = hidden_states.shape
    _, Sk, Cd = ctx_tensor.shape
    dh = H // num_heads

    q = hidden_states @ params["wq"] + params["bq"][0]
    k = ctx_tensor @ params["wk"] + params["bk"][0]
    v = ctx_tensor @ params["wv"] + params["bv"][0]

    def split(x, S):
        return x.reshape(B, S, num_heads, dh).transpose(0, 2, 1, 3)

    qh, kh, vh = split(q, Sq), split(k, Sk), split(v, Sk)
    scores = jnp.einsum("bhqd,bhkd->bhqk", qh, kh) / math.sqrt(dh)
    scores = scores + ctx_att_mask  # broadcast [B,1,1,Sk]
    probs = jax.nn.softmax(scores, axis=-1)
    ctx_layer = jnp.einsum("bhqk,bhkd->bhqd", probs, vh)
    ctx_layer = ctx_layer.transpose(0, 2, 1, 3).reshape(B, Sq, H)

    proj = ctx_layer @ params["wo"] + params["bo"][0]
    res = proj + hidden_states
    mean = res.mean(-1, keepdims=True)
    var = ((res - mean) ** 2).mean(-1, keepdims=True)
    out = (res - mean) / jnp.sqrt(var + ln_eps)
    out = out * params["ln_g"][0] + params["ln_b"][0]
    return out, scores


if __name__ == "__main__":
    # Small config consistent with the module.
    B, Sq, Sk = 2, 8, 16
    H, num_heads = 32, 4
    Cd = H  # ctx_dim defaults to hidden_size

    key = jax.random.PRNGKey(0)
    keys = jax.random.split(key, 16)

    hidden_states = jax.random.normal(keys[0], (B, Sq, H), dtype=jnp.float32)
    ctx_tensor = jax.random.normal(keys[1], (B, Sk, Cd), dtype=jnp.float32)
    # torch-style extended additive mask: 0 where attended, -10000 where masked.
    keep = (jax.random.uniform(keys[2], (B, 1, 1, Sk)) > 0.2).astype(jnp.float32)
    ctx_att_mask = (1.0 - keep) * -10000.0

    def init_linear(k, fan_in, fan_out):
        kw, kb = jax.random.split(k)
        w = jax.random.normal(kw, (fan_in, fan_out), dtype=jnp.float32) * 0.02
        b = jax.random.normal(kb, (1, fan_out), dtype=jnp.float32) * 0.02
        return w, b

    wq, bq = init_linear(keys[3], H, H)
    wk, bk = init_linear(keys[4], Cd, H)
    wv, bv = init_linear(keys[5], Cd, H)
    wo, bo = init_linear(keys[6], H, H)
    params = dict(wq=wq, bq=bq, wk=wk, bk=bk, wv=wv, bv=bv, wo=wo, bo=bo,
                  ln_g=jnp.ones((1, H), jnp.float32),
                  ln_b=jnp.zeros((1, H), jnp.float32))

    out, scores = bert_x_attention(hidden_states, ctx_tensor, ctx_att_mask,
                                   params, num_heads=num_heads)
    jax.block_until_ready((out, scores))

    ref_out, ref_scores = _reference(hidden_states, ctx_tensor, ctx_att_mask,
                                     params, num_heads=num_heads)
    assert jnp.allclose(scores, ref_scores, atol=1e-4, rtol=1e-4), "attention_scores mismatch"
    assert jnp.allclose(out, ref_out, atol=5e-4, rtol=5e-4), "attention_output mismatch"

    print("KERNEL_OK")
</pallas_src>

<mosaic_0001>
module attributes {stable_mosaic.version = 11 : i64} {
  func.func @_bert_xattn_kernel(%arg0: i32, %arg1: i32, %arg2: memref<1x8x32xf32, #tpu.memory_space<vmem>>, %arg3: memref<1x16x32xf32, #tpu.memory_space<vmem>>, %arg4: memref<1x1x16xf32, #tpu.memory_space<vmem>>, %arg5: memref<32x32xf32, #tpu.memory_space<vmem>>, %arg6: memref<32x64xf32, #tpu.memory_space<vmem>>, %arg7: memref<32x32xf32, #tpu.memory_space<vmem>>, %arg8: memref<8x32xf32, #tpu.memory_space<vmem>>, %arg9: memref<1x8x32xf32, #tpu.memory_space<vmem>>, %arg10: memref<1x4x8x16xf32, #tpu.memory_space<vmem>>, %arg11: memref<4x16x8xf32, #tpu.memory_space<vmem>>, %arg12: memref<4x16x8xf32, #tpu.memory_space<vmem>>) attributes {dimension_semantics = [#tpu.dimension_semantics<parallel>, #tpu.dimension_semantics<arbitrary>], iteration_bounds = array<i64: 2, 1>, scalar_prefetch = 0 : i64, scratch_operands = 2 : i64, tpu.core_type = #tpu.core_type<tc>, window_params = [{transform_indices = @transform_0, window_bounds = array<i64: 1, 8, 32>}, {transform_indices = @transform_1, window_bounds = array<i64: 1, 16, 32>}, {transform_indices = @transform_2, window_bounds = array<i64: 1, 1, 16>}, {pipeline_mode = #tpu.pipeline_mode<synchronous>, transform_indices = @transform_3, window_bounds = array<i64: 32, 32>}, {pipeline_mode = #tpu.pipeline_mode<synchronous>, transform_indices = @transform_4, window_bounds = array<i64: 32, 64>}, {pipeline_mode = #tpu.pipeline_mode<synchronous>, transform_indices = @transform_5, window_bounds = array<i64: 32, 32>}, {pipeline_mode = #tpu.pipeline_mode<synchronous>, transform_indices = @transform_6, window_bounds = array<i64: 8, 32>}, {transform_indices = @transform_7, window_bounds = array<i64: 1, 8, 32>}, {transform_indices = @transform_8, window_bounds = array<i64: 1, 4, 8, 16>}]} {
    %c0 = arith.constant 0 : index
    %c0_0 = arith.constant 0 : index
    %0 = vector.load %arg8[%c0, %c0_0] : memref<8x32xf32, #tpu.memory_space<vmem>>, vector<8x32xf32>
    %1 = vector.extract_strided_slice %0 {offsets = [0, 0], sizes = [1, 32], strides = [1, 1]} : vector<8x32xf32> to vector<1x32xf32>
    %2 = vector.extract_strided_slice %0 {offsets = [1, 0], sizes = [1, 32], strides = [1, 1]} : vector<8x32xf32> to vector<1x32xf32>
    %3 = vector.extract_strided_slice %0 {offsets = [2, 0], sizes = [1, 32], strides = [1, 1]} : vector<8x32xf32> to vector<1x32xf32>
    %4 = vector.extract_strided_slice %0 {offsets = [3, 0], sizes = [1, 32], strides = [1, 1]} : vector<8x32xf32> to vector<1x32xf32>
    %5 = vector.extract_strided_slice %0 {offsets = [4, 0], sizes = [1, 32], strides = [1, 1]} : vector<8x32xf32> to vector<1x32xf32>
    %6 = vector.extract_strided_slice %0 {offsets = [5, 0], sizes = [1, 32], strides = [1, 1]} : vector<8x32xf32> to vector<1x32xf32>
    %c0_i32 = arith.constant 0 : i32
    %7 = arith.cmpi eq, %arg1, %c0_i32 : i32
    %8 = arith.extui %7 : i1 to i32
    %c0_i32_1 = arith.constant 0 : i32
    %9 = arith.cmpi ne, %8, %c0_i32_1 : i32
    scf.if %9 {
      %c0_37 = arith.constant 0 : index
      %c0_38 = arith.constant 0 : index
      %c0_39 = arith.constant 0 : index
      %76 = vector.load %arg3[%c0_37, %c0_38, %c0_39] : memref<1x16x32xf32, #tpu.memory_space<vmem>>, vector<1x16x32xf32>
      %77 = vector.shape_cast %76 : vector<1x16x32xf32> to vector<16x32xf32>
      %c0_40 = arith.constant 0 : index
      %c0_41 = arith.constant 0 : index
      %78 = vector.load %arg6[%c0_40, %c0_41] : memref<32x64xf32, #tpu.memory_space<vmem>>, vector<32x64xf32>
      %cst_42 = arith.constant dense<0.000000e+00> : vector<16x64xf32>
      %79 = tpu.matmul %77, %78, %cst_42 {dimension_numbers = #tpu.dot_dimension_numbers<[1], [0], [0], [1], [0, 0, 1, 1], [], []>} : vector<16x32xf32>, vector<32x64xf32>, vector<16x64xf32> -> vector<16x64xf32>
      %80 = vector.extract_strided_slice %79 {offsets = [0, 0], sizes = [16, 32], strides = [1, 1]} : vector<16x64xf32> to vector<16x32xf32>
      %81 = vector.broadcast %2 : vector<1x32xf32> to vector<16x32xf32>
      %82 = arith.addf %80, %81 : vector<16x32xf32>
      %83 = vector.extract_strided_slice %79 {offsets = [0, 32], sizes = [16, 32], strides = [1, 1]} : vector<16x64xf32> to vector<16x32xf32>
      %84 = vector.broadcast %3 : vector<1x32xf32> to vector<16x32xf32>
      %85 = arith.addf %83, %84 : vector<16x32xf32>
      %86 = vector.shape_cast %82 : vector<16x32xf32> to vector<16x4x8xf32>
      %87 = tpu.transpose %86, [1, 0, 2] : vector<16x4x8xf32> -> vector<4x16x8xf32>
      %c0_43 = arith.constant 0 : index
      %c0_44 = arith.constant 0 : index
      %c0_45 = arith.constant 0 : index
      %88 = vector.load %arg11[%c0_43, %c0_44, %c0_45] : memref<4x16x8xf32, #tpu.memory_space<vmem>>, vector<4x16x8xf32>
      tpu.vector_store %arg11[%c0_43, %c0_44, %c0_45], %87 {strides = array<i32>} : memref<4x16x8xf32, #tpu.memory_space<vmem>>, vector<4x16x8xf32>,
      %89 = vector.shape_cast %85 : vector<16x32xf32> to vector<16x4x8xf32>
      %90 = tpu.transpose %89, [1, 0, 2] : vector<16x4x8xf32> -> vector<4x16x8xf32>
      %c0_46 = arith.constant 0 : index
      %c0_47 = arith.constant 0 : index
      %c0_48 = arith.constant 0 : index
      %91 = vector.load %arg12[%c0_46, %c0_47, %c0_48] : memref<4x16x8xf32, #tpu.memory_space<vmem>>, vector<4x16x8xf32>
      tpu.vector_store %arg12[%c0_46, %c0_47, %c0_48], %90 {strides = array<i32>} : memref<4x16x8xf32, #tpu.memory_space<vmem>>, vector<4x16x8xf32>,
    } else {
    }
    %c0_2 = arith.constant 0 : index
    %c0_3 = arith.constant 0 : index
    %c0_4 = arith.constant 0 : index
    %10 = vector.load %arg2[%c0_2, %c0_3, %c0_4] : memref<1x8x32xf32, #tpu.memory_space<vmem>>, vector<1x8x32xf32>
    %11 = vector.shape_cast %10 : vector<1x8x32xf32> to vector<8x32xf32>
    %c0_5 = arith.constant 0 : index
    %c0_6 = arith.constant 0 : index
    %c0_7 = arith.constant 0 : index
    %12 = vector.load %arg4[%c0_5, %c0_6, %c0_7] : memref<1x1x16xf32, #tpu.memory_space<vmem>>, vector<1x1x16xf32>
    %13 = vector.shape_cast %12 : vector<1x1x16xf32> to vector<1x16xf32>
    %c0_8 = arith.constant 0 : index
    %c0_9 = arith.constant 0 : index
    %14 = vector.load %arg5[%c0_8, %c0_9] : memref<32x32xf32, #tpu.memory_space<vmem>>, vector<32x32xf32>
    %cst = arith.constant dense<0.000000e+00> : vector<8x32xf32>
    %15 = tpu.matmul %11, %14, %cst {dimension_numbers = #tpu.dot_dimension_numbers<[1], [0], [0], [1], [0, 0, 1, 1], [], []>} : vector<8x32xf32>, vector<32x32xf32>, vector<8x32xf32> -> vector<8x32xf32>
    %16 = vector.broadcast %1 : vector<1x32xf32> to vector<8x32xf32>
    %17 = arith.addf %15, %16 : vector<8x32xf32>
    %cst_10 = arith.constant 0.353553385 : f32
    %18 = vector.broadcast %cst_10 : f32 to vector<8x32xf32>
    %19 = arith.mulf %17, %18 : vector<8x32xf32>
    %20 = vector.shape_cast %19 : vector<8x32xf32> to vector<8x4x8xf32>
    %21 = tpu.transpose %20, [1, 0, 2] : vector<8x4x8xf32> -> vector<4x8x8xf32>
    %c0_11 = arith.constant 0 : index
    %c0_12 = arith.constant 0 : index
    %c0_13 = arith.constant 0 : index
    %22 = vector.load %arg11[%c0_11, %c0_12, %c0_13] : memref<4x16x8xf32, #tpu.memory_space<vmem>>, vector<4x16x8xf32>
    "tpu.trace_start"() <{level = 10 : i32, message = "hqd,hkd->hqk"}> : () -> ()
    %cst_14 = arith.constant dense<0.000000e+00> : vector<4x8x16xf32>
    %23 = tpu.matmul %21, %22, %cst_14 {dimension_numbers = #tpu.dot_dimension_numbers<[2], [2], [1], [1], [0, 0, 0, 1, 1, 1], [0], [0]>} : vector<4x8x8xf32>, vector<4x16x8xf32>, vector<4x8x16xf32> -> vector<4x8x16xf32>
    "tpu.trace_stop"() : () -> ()
    %24 = vector.shape_cast %13 : vector<1x16xf32> to vector<1x1x16xf32>
    %25 = vector.broadcast %24 : vector<1x1x16xf32> to vector<4x8x16xf32>
    %26 = arith.addf %23, %25 : vector<4x8x16xf32>
    %c0_15 = arith.constant 0 : index
    %c0_16 = arith.constant 0 : index
    %c0_17 = arith.constant 0 : index
    %c0_18 = arith.constant 0 : index
    %27 = vector.load %arg10[%c0_15, %c0_16, %c0_17, %c0_18] : memref<1x4x8x16xf32, #tpu.memory_space<vmem>>, vector<1x4x8x16xf32>
    %28 = vector.shape_cast %27 : vector<1x4x8x16xf32> to vector<4x8x16xf32>
    %29 = vector.shape_cast %26 : vector<4x8x16xf32> to vector<1x4x8x16xf32>
    tpu.vector_store %arg10[%c0_15, %c0_16, %c0_17, %c0_18], %29 {strides = array<i32>} : memref<1x4x8x16xf32, #tpu.memory_space<vmem>>, vector<1x4x8x16xf32>,
    %cst_19 = arith.constant dense<0xFF800000> : vector<4x8xf32>
    %30 = vector.multi_reduction <maximumf>, %26, %cst_19 [2] : vector<4x8x16xf32> to vector<4x8xf32>
    %31 = vector.shape_cast %30 : vector<4x8xf32> to vector<4x8x1xf32>
    %32 = vector.broadcast %31 : vector<4x8x1xf32> to vector<4x8x16xf32>
    %33 = arith.subf %26, %32 : vector<4x8x16xf32>
    %34 = math.exp %33 : vector<4x8x16xf32>
    %cst_20 = arith.constant dense<0.000000e+00> : vector<4x8xf32>
    %35 = vector.multi_reduction <add>, %34, %cst_20 [2] : vector<4x8x16xf32> to vector<4x8xf32>
    %36 = vector.shape_cast %35 : vector<4x8xf32> to vector<4x8x1xf32>
    %37 = tpu.reciprocal %36 {approx = true} : vector<4x8x1xf32> -> vector<4x8x1xf32>
    %38 = arith.mulf %36, %37 : vector<4x8x1xf32>
    %cst_21 = arith.constant 2.000000e+00 : f32
    %39 = vector.broadcast %cst_21 : f32 to vector<4x8x1xf32>
    %40 = arith.subf %39, %38 : vector<4x8x1xf32>
    %41 = arith.mulf %37, %40 : vector<4x8x1xf32>
    %42 = vector.broadcast %41 : vector<4x8x1xf32> to vector<4x8x16xf32>
    %43 = arith.mulf %34, %42 : vector<4x8x16xf32>
    %c0_22 = arith.constant 0 : index
    %c0_23 = arith.constant 0 : index
    %c0_24 = arith.constant 0 : index
    %44 = vector.load %arg12[%c0_22, %c0_23, %c0_24] : memref<4x16x8xf32, #tpu.memory_space<vmem>>, vector<4x16x8xf32>
    "tpu.trace_start"() <{level = 10 : i32, message = "hqk,hkd->hqd"}> : () -> ()
    %cst_25 = arith.constant dense<0.000000e+00> : vector<4x8x8xf32>
    %45 = tpu.matmul %43, %44, %cst_25 {dimension_numbers = #tpu.dot_dimension_numbers<[2], [1], [1], [2], [0, 0, 0, 1, 1, 2], [0], [0]>} : vector<4x8x16xf32>, vector<4x16x8xf32>, vector<4x8x8xf32> -> vector<4x8x8xf32>
    "tpu.trace_stop"() : () -> ()
    %46 = tpu.transpose %45, [1, 0, 2] : vector<4x8x8xf32> -> vector<8x4x8xf32>
    %47 = vector.shape_cast %46 : vector<8x4x8xf32> to vector<8x32xf32>
    %c0_26 = arith.constant 0 : index
    %c0_27 = arith.constant 0 : index
    %48 = vector.load %arg7[%c0_26, %c0_27] : memref<32x32xf32, #tpu.memory_space<vmem>>, vector<32x32xf32>
    %cst_28 = arith.constant dense<0.000000e+00> : vector<8x32xf32>
    %49 = tpu.matmul %47, %48, %cst_28 {dimension_numbers = #tpu.dot_dimension_numbers<[1], [0], [0], [1], [0, 0, 1, 1], [], []>} : vector<8x32xf32>, vector<32x32xf32>, vector<8x32xf32> -> vector<8x32xf32>
    %50 = vector.broadcast %4 : vector<1x32xf32> to vector<8x32xf32>
    %51 = arith.addf %49, %50 : vector<8x32xf32>
    %52 = arith.addf %51, %11 : vector<8x32xf32>
    %cst_29 = arith.constant dense<0.000000e+00> : vector<8xf32>
    %53 = vector.multi_reduction <add>, %52, %cst_29 [1] : vector<8x32xf32> to vector<8xf32>
    %54 = vector.shape_cast %53 : vector<8xf32> to vector<8x1xf32>
    %cst_30 = arith.constant 3.200000e+01 : f32
    %55 = vector.broadcast %cst_30 : f32 to vector<8x1xf32>
    %56 = arith.divf %54, %55 : vector<8x1xf32>
    %57 = vector.broadcast %56 : vector<8x1xf32> to vector<8x32xf32>
    %58 = arith.subf %52, %57 : vector<8x32xf32>
    %59 = arith.mulf %58, %58 : vector<8x32xf32>
    %cst_31 = arith.constant dense<0.000000e+00> : vector<8xf32>
    %60 = vector.multi_reduction <add>, %59, %cst_31 [1] : vector<8x32xf32> to vector<8xf32>
    %61 = vector.shape_cast %60 : vector<8xf32> to vector<8x1xf32>
    %cst_32 = arith.constant 3.200000e+01 : f32
    %62 = vector.broadcast %cst_32 : f32 to vector<8x1xf32>
    %63 = arith.divf %61, %62 : vector<8x1xf32>
    %cst_33 = arith.constant 9.99999996E-13 : f32
    %64 = vector.broadcast %cst_33 : f32 to vector<8x1xf32>
    %65 = arith.addf %63, %64 : vector<8x1xf32>
    %66 = math.rsqrt %65 : vector<8x1xf32>
    %67 = vector.broadcast %66 : vector<8x1xf32> to vector<8x32xf32>
    %68 = arith.mulf %58, %67 : vector<8x32xf32>
    %69 = vector.broadcast %5 : vector<1x32xf32> to vector<8x32xf32>
    %70 = arith.mulf %68, %69 : vector<8x32xf32>
    %71 = vector.broadcast %6 : vector<1x32xf32> to vector<8x32xf32>
    %72 = arith.addf %70, %71 : vector<8x32xf32>
    %c0_34 = arith.constant 0 : index
    %c0_35 = arith.constant 0 : index
    %c0_36 = arith.constant 0 : index
    %73 = vector.load %arg9[%c0_34, %c0_35, %c0_36] : memref<1x8x32xf32, #tpu.memory_space<vmem>>, vector<1x8x32xf32>
    %74 = vector.shape_cast %73 : vector<1x8x32xf32> to vector<8x32xf32>
    %75 = vector.shape_cast %72 : vector<8x32xf32> to vector<1x8x32xf32>
    tpu.vector_store %arg9[%c0_34, %c0_35, %c0_36], %75 {strides = array<i32>} : memref<1x8x32xf32, #tpu.memory_space<vmem>>, vector<1x8x32xf32>,
    return
  }
  func.func @transform_0(%arg0: i32, %arg1: i32) -> (i32, i32, i32) {
    %c0_i32 = arith.constant 0 : i32
    %c0_i32_0 = arith.constant 0 : i32
    return %arg0, %arg1, %c0_i32 : i32, i32, i32
  }
  func.func @transform_1(%arg0: i32, %arg1: i32) -> (i32, i32, i32) {
    %c0_i32 = arith.constant 0 : i32
    %c0_i32_0 = arith.constant 0 : i32
    %c0_i32_1 = arith.constant 0 : i32
    return %arg0, %c0_i32, %c0_i32_0 : i32, i32, i32
  }
  func.func @transform_2(%arg0: i32, %arg1: i32) -> (i32, i32, i32) {
    %c0_i32 = arith.constant 0 : i32
    %c0_i32_0 = arith.constant 0 : i32
    %c0_i32_1 = arith.constant 0 : i32
    return %arg0, %c0_i32, %c0_i32_0 : i32, i32, i32
  }
  func.func @transform_3(%arg0: i32, %arg1: i32) -> (i32, i32) {
    %c0_i32 = arith.constant 0 : i32
    %c0_i32_0 = arith.constant 0 : i32
    %c0_i32_1 = arith.constant 0 : i32
    return %c0_i32, %c0_i32_0 : i32, i32
  }
  func.func @transform_4(%arg0: i32, %arg1: i32) -> (i32, i32) {
    %c0_i32 = arith.constant 0 : i32
    %c0_i32_0 = arith.constant 0 : i32
    %c0_i32_1 = arith.constant 0 : i32
    return %c0_i32, %c0_i32_0 : i32, i32
  }
  func.func @transform_5(%arg0: i32, %arg1: i32) -> (i32, i32) {
    %c0_i32 = arith.constant 0 : i32
    %c0_i32_0 = arith.constant 0 : i32
    %c0_i32_1 = arith.constant 0 : i32
    return %c0_i32, %c0_i32_0 : i32, i32
  }
  func.func @transform_6(%arg0: i32, %arg1: i32) -> (i32, i32) {
    %c0_i32 = arith.constant 0 : i32
    %c0_i32_0 = arith.constant 0 : i32
    %c0_i32_1 = arith.constant 0 : i32
    return %c0_i32, %c0_i32_0 : i32, i32
  }
  func.func @transform_7(%arg0: i32, %arg1: i32) -> (i32, i32, i32) {
    %c0_i32 = arith.constant 0 : i32
    %c0_i32_0 = arith.constant 0 : i32
    return %arg0, %arg1, %c0_i32 : i32, i32, i32
  }
  func.func @transform_8(%arg0: i32, %arg1: i32) -> (i32, i32, i32, i32) {
    %c0_i32 = arith.constant 0 : i32
    %c0_i32_0 = arith.constant 0 : i32
    %c0_i32_1 = arith.constant 0 : i32
    return %arg0, %c0_i32, %arg1, %c0_i32_0 : i32, i32, i32, i32
  }
}

</mosaic_0001>

<bundles_post_ra>
// kernel: tpu_custom_call.1
= control target key start
LH: loop header
LB: loop body
LE: loop exit
PB: predicated region body
PF: predicated region fallthrough
CT: control target
= control target key end

     0   :  { %s3961_s0 = inlined_call_operand.hbm [shape: f32[2,8,32], index: 0, kind: input, shape index: {}]   ;;  %s3962_s1 = inlined_call_operand.hbm [shape: f32[2,16,32], index: 1, kind: input, shape index: {}]   ;;  %s3963_s2 = inlined_call_operand.vmem [shape: f32[2,1,16], index: 2, kind: input, shape index: {}]   ;;  %s3964_s3 = inlined_call_operand.hbm [shape: f32[32,32], index: 3, kind: input, shape index: {}]   ;;  %s3965_s4 = inlined_call_operand.hbm [shape: f32[32,64], index: 4, kind: input, shape index: {}]   ;;  %s3966_s5 = inlined_call_operand.hbm [shape: f32[32,32], index: 5, kind: input, shape index: {}]   ;;  %s3967_s6 = inlined_call_operand.vmem [shape: f32[8,32], index: 6, kind: input, shape index: {}]   ;;  %s3968_s7 = inlined_call_operand.hbm [shape: f32[2,8,32], index: 7, kind: output, shape index: {0}]   ;;  %s3969_s8 = inlined_call_operand.hbm [shape: f32[2,4,8,16], index: 8, kind: output, shape index: {1}]  }
   0x1   :  { %3979 = sst [smem:[#allocation24_spill]] %s3961_s0 }
   0x2   :  { %3980 = sst [smem:[#allocation25_spill]] %s3964_s3 }
   0x3   :  { %3981 = sst [smem:[#allocation26_spill]] %s3968_s7 }
   0x4   :  { %3982 = sst [smem:[#allocation27_spill]] %s3969_s8 }
   0x5   :  { %14 = vsyncpa [#allocation5], 0 }
   0x6   :  { %16 = vsyncpa [#allocation5 + $0x1], 0 }
   0x7   :  { %17 = vsyncpa [#allocation8], 0 }
   0x8   :  { %19 = vsyncpa [#allocation8 + $0x1], 0 }
   0x9   :  { %20 = vsyncpa [#allocation11], 0 }
   0xa   :  { %21 = vsyncpa [#allocation6], 0 }
   0xb   :  { %23 = vsyncpa [#allocation6 + $0x1], 0 }
   0xc   :  { %24 = vsyncpa [#allocation15], 0 }
   0xd   :  { %26 = vsyncpa [#allocation15 + $0x1], 0  ;;  %s3286_s27 = smov 0   ;;  %s3288_s28 = smov 0  }
   0xe   :  { %s3290_s29 = smov 0   ;;  %s3292_s30 = smov 0  }
   0xf   :  { %s3294_s9 = smov 0   ;;  %s3296_s10 = smov 0  }
  0x10 LB: > { %3983 = sst [smem:[#allocation22_spill]] %s3196_s27  ;;  %s3317_s11 = sadd.s32 4294967295, %s3216_s10   ;;  %s3216_s10 = sphi %s3296_s10, %s32_s10   ;;  %s3212_s9 = sphi %s3294_s9, %s4016_s9   ;;  %s3208_s30 = sphi %s3292_s30, %s4015_s30   ;;  %s3204_s29 = sphi %s3290_s29, %s4014_s29   ;;  %s3200_s28 = sphi %s3288_s28, %s4013_s28   ;;  %s3196_s27 = sphi %s3286_s27, %s4012_s27  }
  0x11   : > { %s2570_s12 = sadd.s32 4294967294, %s3216_s10   ;;  %p66_p0 = scmp.ne.s32.totalorder %s3200_s28, %s3196_s27 }
  0x12   : > { %p3970_p1 = scmp.eq.s32.totalorder %s3317_s11, 0  ;;  %p234_p3 = scmp.eq.s32.totalorder %s2570_s12, 1 }
  0x13   : > { %p2571_p5 = scmp.ge.s32.totalorder %s3216_s10, 1  ;;  %p269_p7 = scmp.lt.s32.totalorder %s3216_s10, 3 }
  0x14   : > { %p3326_p4 = por %p3970_p1, %p66_p0  ;;  %p3331_p6 = por %p234_p3, %p66_p0 }
  0x15   : > { %p3336_p8 = pnand %p2571_p5, %p269_p7  ;;  %s3218_s16 = smov [#allocation9]  }
  0x16   : > { %s3984_s13 = scalar_select %p3326_p4, 1, 0 }
  0x17   : > { %s3985_s14 = scalar_select %p3331_p6, 1, 0 }
  0x18   : > { %s3987_s15 = scalar_select %p3336_p8, 1, 0 }
  0x19   : > { %3986 = sst [smem:[#allocation23_spill]] %s3985_s14  ;;  %s281_s17 = sshll.u32 %s3218_s16, 4  ;;  %s3340_s17 = int_to_ptr.vmem [resolvable:$true] %s281_s17 }
  0x1a   : > { %p2828_p9 = pneg %p3336_p8  ;;  %s3219_s19 = smov [#allocation10]  }
  0x1b   : > { %s294_s20 = sshll.u32 %s3219_s19, 4  ;;  %s3220_s21 = smov [#allocation12]   ;;  %s3351_s20 = int_to_ptr.vmem [resolvable:$true] %s294_s20 }
  0x1c   : > { %p3347_p11 = pnand %p2828_p9, %p3970_p1  ;;  %s3353_s22 = sshll.u32 %s3220_s21, 4  ;;  %s308_s22 = int_to_ptr.vmem [resolvable:$true] %s3353_s22 }
  0x1d   : > { %s3989_s3 = sld [smem:[#allocation25_spill]] }
  0x1e   : > { %p3363_p13 = pneg %p3347_p11 }
  0x23   : > { %s2946_s25 = scalar_lea.hbm %s3989_s3, 512 }
  0x24   : > { %p2947_p12 = scmp.ne.s32.totalorder %s3989_s3, %s2946_s25  ;;  %p2953_p5 = scmp.lt.u32.totalorder %s2946_s25, %s3989_s3 }
  0x26   : > { %p2949_p0 = pnand %p3363_p13, %p2947_p12 }
  0x28   : > { %p2950_p3 = pneg %p2949_p0 }
  0x2a   : > { %p2955_p7 = pnand %p2953_p5, %p2950_p3 }
  0x2c   : > { %2958 = shalt.err (!%p2955_p7)
}
  0x2d   : > { %s2959_s23 = scalar_lea.vmem %s3340_s17, 512  ;;  %p2967_p2 = scmp.lt.s32.totalorder %s3340_s17, %s3340_s17 }
  0x2e   : > { %p2960_p9 = scmp.ne.s32.totalorder %s3340_s17, %s2959_s23  ;;  %p2968_p6 = scmp.lt.s32.totalorder %s2959_s23, %s2959_s23 }
  0x30   : > { %p2962_p10 = pnand %p2960_p9, %p3363_p13  ;;  %p2969_p12 = por %p2968_p6, %p2967_p2 }
  0x32   : > { %p2963_p1 = pneg %p2962_p10 }
  0x34   : > { %p2970_p0 = pnand %p2969_p12, %p2963_p1 }
  0x36   : > { %2973 = shalt.err (!%p2970_p0)
}
  0x37   : > { %s3977_s24 = smov 128   ;;  %s3978_s25 = smov 8  }
  0x38   : > { %2831 = dma.hbm_to_vmem [thread:$0]  (!%p3347_p11), %s3989_s3, 512, %s3340_s17, [#allocation8], %s3977_s24, %s3977_s24, %s3978_s25  }
  0x39   : > { %s2974_s23 = scalar_lea.hbm %s3965_s4, 512 }
  0x3a   : > { %p2975_p1 = scmp.ne.s32.totalorder %s3965_s4, %s2974_s23  ;;  %p2981_p10 = scmp.lt.u32.totalorder %s2974_s23, %s3965_s4 }
  0x3c   : > { %p2977_p2 = pnand %p2975_p1, %p3363_p13 }
  0x3e   : > { %p2978_p6 = pneg %p2977_p2 }
  0x40   : > { %p2983_p3 = pnand %p2981_p10, %p2978_p6 }
  0x42   : > { %2986 = shalt.err (!%p2983_p3)
}
  0x43   : > { %s2987_s17 = scalar_lea.vmem %s3351_s20, 512  ;;  %p2995_p12 = scmp.lt.s32.totalorder %s3351_s20, %s3351_s20 }
  0x44   : > { %p2988_p5 = scmp.ne.s32.totalorder %s3351_s20, %s2987_s17  ;;  %p2996_p0 = scmp.lt.s32.totalorder %s2987_s17, %s2987_s17 }
  0x46   : > { %p2990_p7 = pnand %p2988_p5, %p3363_p13  ;;  %p2997_p1 = por %p2996_p0, %p2995_p12 }
  0x48   : > { %p2991_p9 = pneg %p2990_p7 }
  0x4a   : > { %p2998_p2 = pnand %p2997_p1, %p2991_p9 }
  0x4c   : > { %3001 = shalt.err (!%p2998_p2)
}
  0x4d   : > { %2834 = dma.hbm_to_vmem [thread:$0]  (!%p3347_p11), %s3965_s4, 512, %s3351_s20, [#allocation11], %s3977_s24, %s3977_s24, %s3978_s25  }
  0x4e   : > { %s3002_s26 = scalar_lea.hbm %s3966_s5, 512 }
  0x4f   : > { %p3003_p6 = scmp.ne.s32.totalorder %s3966_s5, %s3002_s26  ;;  %p3009_p5 = scmp.lt.u32.totalorder %s3002_s26, %s3966_s5 }
  0x51   : > { %p3005_p10 = pnand %p3003_p6, %p3363_p13 }
  0x53   : > { %p3006_p3 = pneg %p3005_p10 }
  0x55   : > { %p3011_p7 = pnand %p3009_p5, %p3006_p3 }
  0x57   : > { %3014 = shalt.err (!%p3011_p7)
}
  0x58   : > { %s3015_s17 = scalar_lea.vmem %s308_s22, 512  ;;  %p3023_p1 = scmp.lt.s32.totalorder %s308_s22, %s308_s22 }
  0x59   : > { %p3016_p9 = scmp.ne.s32.totalorder %s308_s22, %s3015_s17  ;;  %p3024_p2 = scmp.lt.s32.totalorder %s3015_s17, %s3015_s17 }
  0x5b   : > { %p3018_p12 = pnand %p3016_p9, %p3363_p13  ;;  %p3025_p4 = por %p3024_p2, %p3023_p1 }
  0x5d   : > { %p3019_p0 = pneg %p3018_p12 }
  0x5f   : > { %p3026_p8 = pnand %p3025_p4, %p3019_p0 }
  0x61   : > { %3029 = shalt.err (!%p3026_p8)
}
  0x62   : > { %2837 = dma.hbm_to_vmem [thread:$0]  (!%p3347_p11), %s3966_s5, 512, %s308_s22, [#allocation11], %s3977_s24, %s3977_s24, %s3978_s25  }
  0x63   : > { %s53_s16 = sadd.s32 1, %s3204_s29  ;;  %s44_s18 = sadd.s32 1, %s3212_s9 }
  0x64   : > { %p60_p4 = scmp.ne.s32.totalorder %s3204_s29, %s3200_s28  ;;  %p46_p8 = scmp.ge.s32.totalorder %s44_s18, 2 }
  0x65   : > { %p61_p13 = scmp.eq.s32.totalorder %s3216_s10, 0  ;;  %p3991_p6 = scmp.eq.s32.totalorder %s3317_s11, 1 }
  0x66   : > { %p2855_p3 = scmp.lt.s32.totalorder %s3216_s10, 2  ;;  %s4018_s18 = smov (%p46_p8, %s44_s18), 0 }
  0x67   : > { %p3442_p10 = por %p3991_p6, %p60_p4  ;;  %p62_p5 = por %p61_p13, %p60_p4 }
  0x68   : > { %s3450_s27 = sand.u32 1, %s3204_s29   ;;  %s48_s22 = ssub.s32 %s3212_s9, %s4018_s18 }
  0x69   : > { %p51_p11 = scmp.eq.s32.totalorder %s48_s22, 0  ;;  %s2576_s14 = sshll.u32 %s3450_s27, 3 }
  0x6a   : > { %s2577_s26 = sshll.u32 %s3212_s9, 7  ;;  %s3993_s0 = sld [smem:[#allocation24_spill]] }
  0x6b   : > { %s3457_s12 = scalar_select %p51_p11, %s3204_s29, %s53_s16  }
  0x6c   : > { %s328_s17 = scalar_lea.vmem [#allocation4], %s2576_s14  ;;  %p3468_p7 = pnand %p2855_p3, %p62_p5 }
  0x6d   : > { %s336_s20 = sshll.u32 %s328_s17, 4  ;;  %s2578_s16 = sshll.u32 %s3450_s27, 4  ;;  %s3464_s20 = int_to_ptr.vmem [resolvable:$true] %s336_s20 }
  0x6e   : > { %s325_s19 = scalar_lea.sflag [#allocation5], %s3450_s27  ;;  %p3032_p12 = pneg %p3468_p7 }
  0x70   : > { %s3462_s23 = scalar_lea.hbm %s3993_s0, %s2577_s26  ;;  %s3035_s17 = scalar_lea.hbm %s3993_s0, 256 }
  0x71   : > { %s3030_s26 = scalar_lea.hbm %s3462_s23, 128  ;;  %p3036_p2 = scmp.lt.u32.totalorder %s3462_s23, %s3993_s0 }
  0x72   : > { %p3031_p9 = scmp.ne.s32.totalorder %s3462_s23, %s3030_s26  ;;  %p3037_p4 = scmp.lt.u32.totalorder %s3035_s17, %s3030_s26 }
  0x73   : > { %p3039_p13 = scmp.lt.u32.totalorder %s3030_s26, %s3462_s23 }
  0x74   : > { %p3033_p0 = pnand %p3032_p12, %p3031_p9  ;;  %p3038_p8 = por %p3037_p4, %p3036_p2 }
  0x76   : > { %p3034_p1 = pneg %p3033_p0  ;;  %p3040_p6 = por %p3039_p13, %p3038_p8 }
  0x78   : > { %p3041_p3 = pnand %p3040_p6, %p3034_p1 }
  0x7a   : > { %3044 = shalt.err (!%p3041_p3)
}
  0x7b   : > { %s3045_s22 = scalar_lea.vmem %s3464_s20, 128  ;;  %s3223_s14 = smov [#allocation4]  }
  0x7c   : > { %p3046_p5 = scmp.ne.s32.totalorder %s3464_s20, %s3045_s22  ;;  %s3050_s21 = sshll.u32 %s3223_s14, 4  ;;  %s3051_s21 = int_to_ptr.vmem [resolvable:$false] %s3050_s21 }
  0x7d   : > { %s3052_s24 = scalar_lea.vmem %s3051_s21, 256  ;;  %p3053_p0 = scmp.lt.s32.totalorder %s3464_s20, %s3051_s21 }
  0x7e   : > { %p3048_p11 = pnand %p3046_p5, %p3032_p12  ;;  %p3054_p2 = scmp.lt.s32.totalorder %s3052_s24, %s3045_s22 }
  0x80   : > { %p3049_p9 = pneg %p3048_p11  ;;  %p3055_p4 = por %p3054_p2, %p3053_p0 }
  0x82   : > { %p3056_p8 = pnand %p3055_p4, %p3049_p9 }
  0x84   : > { %3059 = shalt.err (!%p3056_p8)
}
  0x85   : > { %2841 = dma.hbm_to_vmem [thread:$0]  (!%p3468_p7), %s3462_s23, 128, %s3464_s20, %s325_s19  }
  0x86   : > { %s347_s25 = scalar_lea.vmem [#allocation7], %s2578_s16  ;;  %s343_s17 = sand.u32 1, %s3216_s10  }
  0x87   : > { %s354_s26 = sshll.u32 %s347_s25, 4  ;;  %s3995_s14 = sshll.u32 %s3212_s9, 8  ;;  %s3503_s26 = int_to_ptr.vmem [resolvable:$true] %s354_s26 }
  0x88   : > { %s3510_s24 = scalar_lea.hbm %s3962_s1, %s3995_s14  ;;  %s3512_s0 = scalar_lea.sflag [#allocation8], %s343_s17 }
  0x89   : > { %s3060_s3 = scalar_lea.hbm %s3510_s24, 256  ;;  %s3065_s20 = scalar_lea.hbm %s3962_s1, 512 }
  0x8a   : > { %p3061_p1 = scmp.ne.s32.totalorder %s3510_s24, %s3060_s3  ;;  %p3066_p3 = scmp.lt.u32.totalorder %s3510_s24, %s3962_s1 }
  0x8b   : > { %p3067_p5 = scmp.lt.u32.totalorder %s3065_s20, %s3060_s3  ;;  %p3069_p9 = scmp.lt.u32.totalorder %s3060_s3, %s3510_s24 }
  0x8c   : > { %p3063_p13 = pnand %p3061_p1, %p3032_p12 }
  0x8d   : > { %p3068_p11 = por %p3067_p5, %p3066_p3 }
  0x8e   : > { %p3064_p6 = pneg %p3063_p13 }
  0x8f   : > { %p3070_p0 = por %p3069_p9, %p3068_p11 }
  0x91   : > { %p3071_p2 = pnand %p3070_p0, %p3064_p6 }
  0x93   : > { %3074 = shalt.err (!%p3071_p2)
}
  0x94   : > { %s3075_s25 = scalar_lea.vmem %s3503_s26, 256  ;;  %s3224_s17 = smov [#allocation7]  }
  0x95   : > { %p3076_p4 = scmp.ne.s32.totalorder %s3503_s26, %s3075_s25  ;;  %s3080_s14 = sshll.u32 %s3224_s17, 4  ;;  %s3081_s14 = int_to_ptr.vmem [resolvable:$false] %s3080_s14 }
  0x96   : > { %s3082_s22 = scalar_lea.vmem %s3081_s14, 512  ;;  %p3083_p13 = scmp.lt.s32.totalorder %s3503_s26, %s3081_s14 }
  0x97   : > { %p3078_p8 = pnand %p3076_p4, %p3032_p12  ;;  %p3084_p3 = scmp.lt.s32.totalorder %s3082_s22, %s3075_s25 }
  0x99   : > { %p3079_p1 = pneg %p3078_p8  ;;  %p3085_p5 = por %p3084_p3, %p3083_p13 }
  0x9b   : > { %p3086_p11 = pnand %p3085_p5, %p3079_p1 }
  0x9d   : > { %3089 = shalt.err (!%p3086_p11)
}
  0x9e   : > { %s3996_s3 = smov 8   ;;  %s3997_s21 = smov 128  }
  0x9f   : > { %2844 = dma.hbm_to_vmem [thread:$0]  (!%p3468_p7), %s3510_s24, 256, %s3503_s26, %s3512_s0, %s3997_s21, %s3997_s21, %s3996_s3  }
  0xa0   : > { %p3998_p12 = scmp.ne.s32.totalorder %s3987_s15, 0 }
  0xa1   : > { %s3544_s27 = sand.u32 (!%p3998_p12), 1, %s3200_s28   ;;  %p3999_p6 = scmp.ne.s32.totalorder (!%p3998_p12), %s3984_s13, 0 }
  0xa2   : > { %372 = sbr.rel (%p3998_p12) target bundleno = 2035 (0x7f3), region = 48  ;;  %s2582_s23 = sshll.u32 (!%p3998_p12), %s3544_s27, 3 }
  0xa3   : > { %s375_s20 = scalar_lea.sflag (!%p3998_p12), [#allocation5], %s3544_s27  ;;  %s3550_s7 = scalar_lea.vmem (!%p3998_p12), [#allocation4], %s2582_s23 }
  0xa9   : > { %3171 = dma.done.wait (%p3999_p6), %s375_s20, 128  }
  0xaa   : > { %3173 = vsyncadd (%p3999_p6), %s375_s20, 4294967168  ;;  %s383_s0 = sand.u32 1, %s3317_s11   ;;  %s2583_s15 = sshll.u32 %s3544_s27, 4 }
  0xab   : > { %s384_s26 = scalar_lea.sflag [#allocation8], %s383_s0  ;;  %s3558_s24 = scalar_lea.vmem [#allocation7], %s2583_s15 }
  0xac   : > { %3175 = dma.done.wait (%p3999_p6), %s384_s26, 256  }
  0xad   : > { %3177 = vsyncadd (%p3999_p6), %s384_s26, 4294967040  ;;  %p4000_p7 = scmp.eq.s32.totalorder %s3317_s11, 0 }
  0xaf   : > { %3179 = dma.done.wait (%p4000_p7), [#allocation8], 512   ;;  %p4001_p9 = pmov %p4000_p7 }
  0xb0   : > { %p4002_p0 = pmov %p4000_p7 }
  0xb1   : > { %3181 = vsyncadd (%p4001_p9), [#allocation8], 4294966784 }
  0xb2   : > { %3183 = dma.done.wait (%p4002_p0), [#allocation11], 1024   ;;  %p4003_p2 = pmov %p4002_p0 }
  0xb3   : > { %v3225_v0 = vmov 0.0|0.0   ;;  %vm3226_vm0 = vmmov 0   ;;  %v3227_v1 = vmov 0.0   ;;  %vm459_vm1 = vcmask 261120   ;;  %v455_v2 = vld [vmem:[#allocation10] sm:$0xff]  ;;  %v456_v3 = vld [vmem:[#allocation10 + $0x8] sm:$0xff] }
  0xb4   : > { %3185 = vsyncadd (%p4003_p2), [#allocation11], 4294966272  ;;  %2768 = vmatprep.subr.bf16.mxu1 %v3225_v0  ;;  %2690 = vmatprep.mubr.msk.f32.mxu1 %vm3226_vm0, %v3227_v1  ;;  %v457_v4 = vld [vmem:[#allocation10 + $0x10] sm:$0xff]  ;;  %v2760_v5 = vpack.c.bf16 %v456_v3, %v455_v2  ;;  %v458_v6 = vld [vmem:[#allocation10 + $0x18] sm:$0xff]  ;;  %v541_v17 = vlaneseq  ;;  %s3228_s16 = smov 112   ;;  %s3229_s19 = smov 120  }
  0xb5   : > { %v453_v7 = vld [vmem:[%s3558_s24] sm:$0xff]  ;;  %v2764_v8 = vpack.c.bf16 %v458_v6, %v457_v4  ;;  %v1179_v10 = vld [vmem:[#allocation9 + $0x8] sm:$0xff]  ;;  %v1181_v13 = vld [vmem:[#allocation9 + $0x18] sm:$0xff]  ;;  %s3230_s25 = smov 104   ;;  %s3231_s17 = smov 32   ;;  %vm849_vm2 = vcmask 64512  }
  0xb6   : > { %2679 = vmatprep.mubr.msk.f32.mxu0 %vm459_vm1, %v453_v7  ;;  %v1178_v9 = vld [vmem:[#allocation9] sm:$0xff]  ;;  %v1180_v11 = vld [vmem:[#allocation9 + $0x10] sm:$0xff]  ;;  %2761 = vmatprep.subr.bf16.mxu0 %v2760_v5  ;;  %v454_v15 = vld [vmem:[%s3558_s24 + $0x8] sm:$0xff]  ;;  %v3591_v18 = vshrl.u32 %v541_v17, 7  ;;  %v3232_v34 = vmov 1983009808  }
  0xb7   : > { %v2769_v12 = vpack.c.bf16 %v1179_v10, %v1178_v9  ;;  %2763 = vmatpush3.bf16.msra.mxu0 %v2760_v5  ;;  %v2772_v14 = vpack.c.bf16 %v1181_v13, %v1180_v11  ;;  %v3580_v16 = vld [vmem:[%s3550_s7] sm:$0xff]  ;;  %v580_v35 = vunpack.c.l.s4 %v3232_v34  ;;  %v3233_v39 = vmov 1934713408   ;;  %vm3694_vm3 = vmpackc.low %vm849_vm2, %vm849_vm2  ;;  %p445_p4 = scmp.lt.s32.totalorder %s3208_s30, 1  ;;  %s2588_s20 = sshll.u32 %s3544_s27, 5 }
  0xb8   : > { %2765 = vmatprep.subr.bf16.mxu0 %v2764_v8  ;;  %v543_v19 = vsub.s32 1, %v3591_v18  ;;  %v3597_v20 = vld [vmem:[%s3967_s6] sm:$0xff]  ;;  %v1184_v22 = vsub.s32 0, %v3591_v18  ;;  %v549_v32 = vsub.s32 2, %v3591_v18  ;;  %v612_v40 = vunpack.c.l.s4 %v3233_v39  ;;  %s3738_s7 = scalar_lea.vmem [#allocation14], %s2588_s20  ;;  %s3234_s0 = smov 96  }
  0xb9   : > { %2770 = vmatpush3.bf16.msra.mxu1 %v2769_v12  ;;  %v581_v38 = vunpack.c.0.s8 %v580_v35  ;;  %s446_s14 = scalar_select %p445_p4, %s3208_s30, 1  ;;  %vm1738_vm4 = vcmask 130048   ;;  %vm2249_vm5 = vcmask 195584  }
  0xba   : > { %2771 = vmatprep.subr.bf16.mxu1 %v3225_v0  ;;  %v544_v21 = vrot.slane %v3597_v20, %v543_v19  ;;  %v1185_v28 = vrot.slane %v3597_v20, %v1184_v22  ;;  %v550_v33 = vrot.slane %v3597_v20, %v549_v32  ;;  %v613_v44 = vunpack.c.0.s8 %v612_v40  ;;  %s3235_s15 = smov 8   ;;  %s3236_s26 = smov 16  }
  0xbb   : > { %2767 = vmatpush3.bf16.msra.mxu0 %v2764_v8  ;;  %v3625_v43 = vsub.s32 %v581_v38, %v3591_v18  ;;  %s447_s21 = scalar_lea.vmem %s3963_s2, %s446_s14  ;;  %s3237_s24 = smov 24  }
  0xbc   : > { %2774 = vmatprep.subr.bf16.mxu0 %v3225_v0  ;;  %v3628_v55 = vsub.s32 %v613_v44, %v3591_v18  ;;  %s2392_s11 = sshll.u32 %s3738_s7, 4  ;;  %s2630_s13 = sshll.u32 %s3208_s30, 9  ;;  %s3866_s11 = int_to_ptr.vmem [resolvable:$true] %s2392_s11 }
  0xbd   : > { %2773 = vmatpush3.bf16.msra.mxu1 %v2772_v14  ;;  %s2364_s14 = scalar_lea.sflag [#allocation15], %s3544_s27  ;;  %s3090_s22 = scalar_lea.vmem %s3866_s11, 512 }
  0xbe   : > { %2778 = vmatprep.subr.bf16.mxu1 %v3225_v0  ;;  %2680 = vmatmul.mubr.msk.f32.vlgmr.msra.gmra.mrb[0].mxu0 %vm459_vm1, %v454_v15  ;;  %p3091_p8 = scmp.ne.s32.totalorder %s3866_s11, %s3090_s22  ;;  %s3238_s3 = smov [#allocation14]  }
  0xbf   : > { %2697 = vmatprep.mubr.msk.f32.mxu0 %vm3226_vm0, %v3227_v1 }
  0xc0   : > { %2691 = vmatmul.mubr.msk.f32.vlgmr.msra.gmra.mrb[0].mxu1 %vm459_vm1, %v3580_v16  ;;  %p3092_p1 = pnand %p3091_p8, %p3442_p10 }
  0xc1   : > { %2704 = vmatprep.mubr.msk.f32.mxu1 %vm3226_vm0, %v3227_v1 }
  0xc2   : > { %p3093_p13 = pneg %p3092_p1 }
 0x191   : > { %v3601_v23 = vpop.f32.mrb[0].mxu0 }
 0x192   : > { %v546_v24 = vadd.f32 %v3601_v23, %v544_v21  ;;  %v3604_v25 = vpop.f32.mrb[1].mxu0 }
 0x193   : > { %v1256_v26 = vpop.f32.mrb[0].mxu1  ;;  %v545_v29 = vadd.f32 %v544_v21, %v3604_v25 }
 0x194   : > { %v2692_v27 = vpop.f32.mrb[1].mxu1  ;;  %567 = vrot.lane.b32.xlu1 %v546_v24, %s3228_s16  ;;  %561 = vrot.lane.b32.xlu0 %v546_v24, %s3229_s19  ;;  %v1257_v30 = vadd.f32 %v1256_v26, %v1185_v28 }
 0x196   : > { %v3612_v31 = vmul.f32 0.35355338, %v1257_v30 }
 0x198   : > { %565 = vrot.lane.b32.xlu1 %v545_v29, %s3228_s16  ;;  %559 = vrot.lane.b32.xlu0 %v545_v29, %s3229_s19 }
 0x19c   : > { %573 = vrot.lane.b32.xlu1 %v546_v24, %s3230_s25  ;;  %571 = vrot.lane.b32.xlu0 %v545_v29, %s3230_s25 }
 0x1a0   : > { %1265 = vrot.lane.b32.xlu1 %v3612_v31, %s3228_s16  ;;  %1262 = vrot.lane.b32.xlu0 %v3612_v31, %s3229_s19 }
 0x1a4   : > { %552 = vrot.lane.b32.xlu1 %v550_v33, %s3231_s17  ;;  %1268 = vrot.lane.b32.xlu0 %v3612_v31, %s3230_s25 }
 0x206   : > { %v568_v36 = vpop.permute.xlu1 %567  ;;  %v562_v37 = vpop.permute.xlu0 %561 }
 0x207   : > { %v645_v45 = vcombine.low %v546_v24, %v568_v36  ;;  %v646_v46 = vcombine.high %v546_v24, %v568_v36 }
 0x209   : > { %v653_v56 = vrot.slane %v645_v45, %v3625_v43  ;;  %v660_v57 = vrot.slane %v646_v46, %v3625_v43 }
 0x20a   : > { %v566_v41 = vpop.permute.xlu1 %565  ;;  %v560_v42 = vpop.permute.xlu0 %559 }
 0x20b   : > { %v577_v47 = vcombine.low %v545_v29, %v566_v41  ;;  %v578_v48 = vcombine.high %v545_v29, %v566_v41 }
 0x20d   : > { %v585_v62 = vrot.slane %v577_v47, %v3625_v43  ;;  %v592_v63 = vrot.slane %v578_v48, %v3625_v43 }
 0x20e   : > { %v574_v49 = vpop.permute.xlu1 %573  ;;  %v572_v50 = vpop.permute.xlu0 %571 }
 0x20f   : > { %v661_v51 = vcombine.low %v562_v37, %v574_v49  ;;  %v662_v52 = vcombine.high %v562_v37, %v574_v49  ;;  %v593_v53 = vcombine.low %v560_v42, %v572_v50  ;;  %v594_v54 = vcombine.high %v560_v42, %v572_v50 }
 0x211   : > { %v669_v58 = vrot.slane %v661_v51, %v3625_v43  ;;  %v676_v59 = vrot.slane %v662_v52, %v3625_v43  ;;  %v601_v60 = vrot.slane %v593_v53, %v3625_v43  ;;  %v608_v61 = vrot.slane %v594_v54, %v3625_v43 }
 0x212   : > { %v1266_v32 = vpop.permute.xlu1 %1265  ;;  %v1263_v37 = vpop.permute.xlu0 %1262 }
 0x213   : > { %v677_v2 = vcombine.low %v653_v56, %v669_v58  ;;  %v678_v3 = vcombine.high %v653_v56, %v669_v58  ;;  %v693_v4 = vcombine.low %v660_v57, %v676_v59  ;;  %v694_v5 = vcombine.high %v660_v57, %v676_v59 }
 0x214   : > { %v609_v6 = vcombine.low %v585_v62, %v601_v60  ;;  %v610_v7 = vcombine.high %v585_v62, %v601_v60  ;;  %v625_v8 = vcombine.low %v592_v63, %v608_v61  ;;  %v626_v9 = vcombine.high %v592_v63, %v608_v61 }
 0x215   : > { %v685_v10 = vrot.slane %v677_v2, %v3628_v55  ;;  %v692_v11 = vrot.slane %v678_v3, %v3628_v55  ;;  %v701_v12 = vrot.slane %v693_v4, %v3628_v55  ;;  %v708_v13 = vrot.slane %v694_v5, %v3628_v55 }
 0x216   : > { %v617_v14 = vrot.slane %v609_v6, %v3628_v55  ;;  %v624_v15 = vrot.slane %v610_v7, %v3628_v55  ;;  %v633_v17 = vrot.slane %v625_v8, %v3628_v55  ;;  %v640_v19 = vrot.slane %v626_v9, %v3628_v55  ;;  %v553_v60 = vpop.permute.xlu1 %552  ;;  %v1269_v3 = vpop.permute.xlu0 %1268 }
 0x217   : > { %v781_v21 = vcombine.low %v685_v10, %v692_v11  ;;  %v2593_v22 = vcombine.high %v685_v10, %v692_v11  ;;  %v797_v24 = vcombine.low %v701_v12, %v708_v13  ;;  %v2594_v26 = vcombine.high %v701_v12, %v708_v13 }
 0x218   : > { %v713_v27 = vcombine.low %v617_v14, %v624_v15  ;;  %v2591_v28 = vcombine.high %v617_v14, %v624_v15  ;;  %v729_v29 = vcombine.low %v633_v17, %v640_v19  ;;  %v2592_v30 = vcombine.high %v633_v17, %v640_v19 }
 0x219   : > { %v788_v33 = vrot.slane %v781_v21, %v3625_v43  ;;  %v796_v34 = vrot.slane %v2593_v22, %v3625_v43  ;;  %v804_v35 = vrot.slane %v797_v24, %v3625_v43  ;;  %v812_v36 = vrot.slane %v2594_v26, %v3625_v43 }
 0x21a   : > { %v720_v38 = vrot.slane %v713_v27, %v3625_v43  ;;  %v728_v39 = vrot.slane %v2591_v28, %v3625_v43  ;;  %v736_v40 = vrot.slane %v729_v29, %v3625_v43  ;;  %v744_v41 = vrot.slane %v2592_v30, %v3625_v43 }
 0x21b   : > { %v813_v42 = vcombine.low %v788_v33, %v796_v34  ;;  %v814_v44 = vcombine.high %v788_v33, %v796_v34  ;;  %v829_v45 = vcombine.low %v804_v35, %v812_v36  ;;  %v830_v46 = vcombine.high %v804_v35, %v812_v36 }
 0x21c   : > { %v745_v47 = vcombine.low %v720_v38, %v728_v39  ;;  %v746_v48 = vcombine.high %v720_v38, %v728_v39  ;;  %v761_v49 = vcombine.low %v736_v40, %v744_v41  ;;  %v762_v50 = vcombine.high %v736_v40, %v744_v41 }
 0x21d   : > { %v821_v51 = vrot.slane %v813_v42, %v3628_v55  ;;  %v828_v52 = vrot.slane %v814_v44, %v3628_v55  ;;  %v837_v53 = vrot.slane %v829_v45, %v3628_v55  ;;  %v844_v54 = vrot.slane %v830_v46, %v3628_v55 }
 0x21e   : > { %v753_v56 = vrot.slane %v745_v47, %v3628_v55  ;;  %v760_v57 = vrot.slane %v746_v48, %v3628_v55  ;;  %v769_v58 = vrot.slane %v761_v49, %v3628_v55  ;;  %v776_v59 = vrot.slane %v762_v50, %v3628_v55 }
 0x21f   : > { %v845_v61 = vcombine.low %v821_v51, %v837_v53  ;;  %v846_v62 = vcombine.high %v821_v51, %v837_v53  ;;  %v847_v63 = vcombine.low %v828_v52, %v844_v54  ;;  %v848_v2 = vcombine.high %v828_v52, %v844_v54 }
 0x220   : > { %v777_v4 = vcombine.low %v753_v56, %v769_v58  ;;  %v778_v5 = vcombine.high %v753_v56, %v769_v58  ;;  %v779_v6 = vcombine.low %v760_v57, %v776_v59  ;;  %v780_v7 = vcombine.high %v760_v57, %v776_v59 }
 0x221   : > { %851 = vst.msk [vmem:[#allocation2 + $0x8] sm:$0xff] %vm849_vm2, %v845_v61  ;;  %853 = vst.msk [vmem:[#allocation2 + $0x18] sm:$0xff] %vm849_vm2, %v846_v62  ;;  %v1271_v8 = vcombine.low %v3612_v31, %v1266_v32  ;;  %v1272_v9 = vcombine.high %v3612_v31, %v1266_v32  ;;  %v3669_v10 = vadd.f32 %v3601_v23, %v553_v60 }
 0x222   : > { %855 = vst.msk [vmem:[#allocation2 + $0x28] sm:$0xff] %vm849_vm2, %v847_v63  ;;  %857 = vst.msk [vmem:[#allocation2 + $0x38] sm:$0xff] %vm849_vm2, %v848_v2  ;;  %v1287_v11 = vcombine.low %v1263_v37, %v1269_v3  ;;  %v1288_v12 = vcombine.high %v1263_v37, %v1269_v3  ;;  %v3684_v15 = vadd.f32 %v553_v60, %v3604_v25  ;;  %v2602_v2 = vld [vmem:[%s447_s21] ss:$0 sm:$0xff]  ;;  %s3094_s21 = sshll.u32 %s3238_s3, 4  ;;  %s3095_s21 = int_to_ptr.vmem [resolvable:$false] %s3094_s21 }
 0x223   : > { %850 = vst.msk [vmem:[#allocation2] sm:$0xff] %vm849_vm2, %v777_v4  ;;  %852 = vst.msk [vmem:[#allocation2 + $0x10] sm:$0xff] %vm849_vm2, %v778_v5  ;;  %866 = vrot.lane.b32.xlu1 %v3669_v10, %s3228_s16  ;;  %862 = vrot.lane.b32.xlu0 %v3669_v10, %s3229_s19  ;;  %v1279_v31 = vrot.slane %v1271_v8, %v3625_v43  ;;  %v1286_v23 = vrot.slane %v1272_v9, %v3625_v43  ;;  %s3096_s20 = scalar_lea.vmem %s3095_s21, 1024  ;;  %p3097_p3 = scmp.lt.s32.totalorder %s3866_s11, %s3095_s21 }
 0x224   : > { %854 = vst.msk [vmem:[#allocation2 + $0x20] sm:$0xff] %vm849_vm2, %v779_v6  ;;  %856 = vst.msk [vmem:[#allocation2 + $0x30] sm:$0xff] %vm849_vm2, %v780_v7  ;;  %v1295_v13 = vrot.slane %v1287_v11, %v3625_v43  ;;  %v1302_v14 = vrot.slane %v1288_v12, %v3625_v43  ;;  %p3098_p5 = scmp.lt.s32.totalorder %s3096_s20, %s3090_s22 }
 0x226   : > { %v1303_v17 = vcombine.low %v1279_v31, %v1295_v13  ;;  %v1304_v19 = vcombine.high %v1279_v31, %v1295_v13  ;;  %v1319_v21 = vcombine.low %v1286_v23, %v1302_v14  ;;  %v1320_v22 = vcombine.high %v1286_v23, %v1302_v14  ;;  %p3099_p11 = por %p3098_p5, %p3097_p3 }
 0x227   : > { %860 = vrot.lane.b32.xlu1 %v3684_v15, %s3229_s19 }
 0x228   : > { %v1311_v24 = vrot.slane %v1303_v17, %v3628_v55  ;;  %v1318_v26 = vrot.slane %v1304_v19, %v3628_v55  ;;  %v1327_v27 = vrot.slane %v1319_v21, %v3628_v55  ;;  %v1334_v28 = vrot.slane %v1320_v22, %v3628_v55  ;;  %v1408_v29 = vld [vmem:[#allocation2 + $0x8] sm:$0xff]  ;;  %v1410_v30 = vld [vmem:[#allocation2 + $0x18] sm:$0xff]  ;;  %p3100_p12 = pnand %p3099_p11, %p3093_p13 }
 0x229   : > { %v1412_v47 = vld [vmem:[#allocation2 + $0x28] sm:$0xff]  ;;  %v1414_v52 = vld [vmem:[#allocation2 + $0x38] sm:$0xff] }
 0x22a   : > { %v1407_v32 = vld [vmem:[#allocation2] sm:$0xff]  ;;  %v1409_v25 = vld [vmem:[#allocation2 + $0x10] sm:$0xff]  ;;  %v1339_v33 = vcombine.low %v1311_v24, %v1318_v26  ;;  %v2600_v34 = vcombine.high %v1311_v24, %v1318_v26  ;;  %v1355_v35 = vcombine.low %v1327_v27, %v1334_v28  ;;  %v2601_v36 = vcombine.high %v1327_v27, %v1334_v28 }
 0x22b   : > { %864 = vrot.lane.b32.xlu1 %v3684_v15, %s3228_s16  ;;  %v2775_v38 = vpack.c.bf16 %v1408_v29, %v1407_v32  ;;  %v2779_v39 = vpack.c.bf16 %v1410_v30, %v1409_v25  ;;  %v1411_v50 = vld [vmem:[#allocation2 + $0x20] sm:$0xff]  ;;  %v1413_v51 = vld [vmem:[#allocation2 + $0x30] sm:$0xff] }
 0x22c   : > { %v1346_v40 = vrot.slane %v1339_v33, %v3625_v43  ;;  %v1354_v41 = vrot.slane %v2600_v34, %v3625_v43  ;;  %v1362_v42 = vrot.slane %v1355_v35, %v3625_v43  ;;  %v1370_v44 = vrot.slane %v2601_v36, %v3625_v43 }
 0x22d   : > { %2777 = vmatpush3.bf16.xpose.msk.msra.mxu0 %vm3694_vm3, %v2775_v38  ;;  %2781 = vmatpush3.bf16.xpose.msk.msra.mxu1 %vm3694_vm3, %v2779_v39  ;;  %v2783_v58 = vpack.c.bf16 %v1412_v47, %v1411_v50  ;;  %v2787_v59 = vpack.c.bf16 %v1414_v52, %v1413_v51 }
 0x22e   : > { %v1371_v45 = vcombine.low %v1346_v40, %v1354_v41  ;;  %v1387_v46 = vcombine.low %v1362_v42, %v1370_v44  ;;  %2782 = vmatprep.subr.bf16.mxu0 %v3225_v0  ;;  %2786 = vmatprep.subr.bf16.mxu1 %v3225_v0  ;;  %v1372_v53 = vcombine.high %v1346_v40, %v1354_v41 }
 0x22f   : > { %v1388_v54 = vcombine.high %v1362_v42, %v1370_v44 }
 0x230   : > { %v1379_v48 = vrot.slane %v1371_v45, %v3628_v55  ;;  %v1395_v49 = vrot.slane %v1387_v46, %v3628_v55  ;;  %v1386_v60 = vrot.slane %v1372_v53, %v3628_v55 }
 0x231   : > { %v1402_v61 = vrot.slane %v1388_v54, %v3628_v55 }
 0x232   : > { %v1403_v56 = vcombine.low %v1379_v48, %v1395_v49  ;;  %v1404_v57 = vcombine.high %v1379_v48, %v1395_v49 }
 0x233   : > { %v1405_v62 = vcombine.low %v1386_v60, %v1402_v61  ;;  %v1406_v63 = vcombine.high %v1386_v60, %v1402_v61 }
 0x234   : > { %2698 = vmatmul.mubr.msk.f32.vlgmr.msra.gmra.mrb[2].mxu0 %vm849_vm2, %v1403_v56  ;;  %2705 = vmatmul.mubr.msk.f32.vlgmr.msra.gmra.mrb[2].mxu1 %vm849_vm2, %v1404_v57 }
 0x235   : > { %2785 = vmatpush3.bf16.xpose.msk.msra.mxu0 %vm3694_vm3, %v2783_v58  ;;  %2789 = vmatpush3.bf16.xpose.msk.msra.mxu1 %vm3694_vm3, %v2787_v59 }
 0x236   : > { %2711 = vmatprep.mubr.msk.f32.mxu0 %vm3226_vm0, %v3227_v1  ;;  %2718 = vmatprep.mubr.msk.f32.mxu1 %vm3226_vm0, %v3227_v1 }
 0x237   : > { %2790 = vmatprep.subr.bf16.mxu1 %v3225_v0  ;;  %2796 = vmatprep.subr.bf16.mxu0 %v3225_v0 }
 0x23c   : > { %2712 = vmatmul.mubr.msk.f32.vlgmr.msra.gmra.mrb[4].mxu0 %vm849_vm2, %v1405_v62  ;;  %2719 = vmatmul.mubr.msk.f32.vlgmr.msra.gmra.mrb[4].mxu1 %vm849_vm2, %v1406_v63 }
 0x23d   : > { %2725 = vmatprep.mubr.msk.f32.mxu1 %vm3226_vm0, %v3227_v1  ;;  %2739 = vmatprep.mubr.msk.f32.mxu0 %vm3226_vm0, %v3227_v1 }
 0x295   : > { %v867_v22 = vpop.permute.xlu1 %866  ;;  %v863_v26 = vpop.permute.xlu0 %862 }
 0x299   : > { %v861_v24 = vpop.permute.xlu1 %860 }
 0x29d   : > { %v865_v27 = vpop.permute.xlu1 %864 }
 0x307   : > { %v1497_v3 = vpop.f32.mrb[2].mxu0  ;;  %v1576_v4 = vpop.f32.mrb[2].mxu1 }
 0x308   : > { %v1498_v5 = vadd.f32 %v2602_v2, %v1497_v3  ;;  %v1577_v6 = vadd.f32 %v2602_v2, %v1576_v4  ;;  %v2699_v7 = vpop.f32.mrb[3].mxu0  ;;  %v2706_v8 = vpop.f32.mrb[3].mxu1 }
 0x30a   : > { %1739 = vst.msk [vmem:[%s3738_s7] sm:$0xff] %vm1738_vm4, %v1498_v5  ;;  %1740 = vst.msk [vmem:[%s3738_s7 + $0x8] sm:$0xff] %vm1738_vm4, %v1577_v6  ;;  %v1746_v9 = vsel %vm1738_vm4, %v1577_v6, -inf  ;;  %v1743_v11 = vsel %vm1738_vm4, %v1498_v5, -inf }
 0x30b   : > { %1747 = vmax.xlane.f32.xlu1 %v1746_v9  ;;  %1744 = vmax.xlane.f32.xlu0 %v1743_v11 }
 0x30f   : > { %v1655_v12 = vpop.f32.mrb[4].mxu0  ;;  %v1734_v31 = vpop.f32.mrb[4].mxu1 }
 0x310   : > { %v1656_v23 = vadd.f32 %v2602_v2, %v1655_v12  ;;  %v1735_v13 = vadd.f32 %v2602_v2, %v1734_v31  ;;  %v2713_v14 = vpop.f32.mrb[5].mxu0  ;;  %v2720_v17 = vpop.f32.mrb[5].mxu1 }
 0x312   : > { %1741 = vst.msk [vmem:[%s3738_s7 + $0x10] sm:$0xff] %vm1738_vm4, %v1656_v23  ;;  %1742 = vst.msk [vmem:[%s3738_s7 + $0x18] sm:$0xff] %vm1738_vm4, %v1735_v13  ;;  %v1749_v19 = vsel %vm1738_vm4, %v1656_v23, -inf  ;;  %v1752_v21 = vsel %vm1738_vm4, %v1735_v13, -inf }
 0x313   : > { %1750 = vmax.xlane.f32.xlu0 %v1749_v19 }
 0x317   : > { %1753 = vmax.xlane.f32.xlu0 %v1752_v21 }
 0x31c   : > { %870 = vrot.lane.b32.xlu1 %v3669_v10, %s3230_s25 }
 0x320   : > { %872 = vrot.lane.b32.xlu1 %v3684_v15, %s3234_s0 }
 0x324   : > { %874 = vrot.lane.b32.xlu1 %v3669_v10, %s3234_s0 }
 0x328   : > { %876 = vrot.lane.b32.xlu1 %v861_v24, %s3234_s0 }
 0x32c   : > { %878 = vrot.lane.b32.xlu1 %v863_v26, %s3234_s0 }
 0x32d   : > { %868 = vrot.lane.b32.xlu0 %v3684_v15, %s3230_s25  ;;  %s4006_s25 = sld [smem:[#allocation27_spill]] }
 0x330   : > { %880 = vrot.lane.b32.xlu1 %v865_v27, %s3234_s0 }
 0x333   : > { %s3872_s17 = scalar_lea.hbm %s4006_s25, %s2630_s13 }
 0x334   : > { %882 = vrot.lane.b32.xlu1 %v867_v22, %s3234_s0 }
 0x398   : > { %v1748_v28 = vpop.xlane.xlu1 %1747  ;;  %v1745_v29 = vpop.xlane.xlu0 %1744 }
 0x399   : > { %v1756_v30 = vsub.f32 %v1577_v6, %v1748_v28  ;;  %v1755_v32 = vsub.f32 %v1498_v5, %v1745_v29 }
 0x39b   : > { %v1759_v25 = vmul.f32 1.442695, %v1755_v32  ;;  %v1761_v10 = vmul.f32 1.442695, %v1756_v30 }
 0x39c   : > { %v871_v40 = vpop.permute.xlu1 %870 }
 0x39d   : > { %2927 = vpow2.f32 %v1759_v25 }
 0x39e   : > { %2929 = vpow2.f32 %v1761_v10 }
 0x3a0   : > { %v1751_v33 = vpop.xlane.xlu0 %1750  ;;  %v873_v49 = vpop.permute.xlu1 %872 }
 0x3a1   : > { %v1757_v45 = vsub.f32 %v1656_v23, %v1751_v33 }
 0x3a3   : > { %v1763_v46 = vmul.f32 1.442695, %v1757_v45 }
 0x3a4   : > { %v1754_v34 = vpop.xlane.xlu0 %1753  ;;  %v875_v50 = vpop.permute.xlu1 %874 }
 0x3a5   : > { %v1758_v35 = vsub.f32 %v1735_v13, %v1754_v34 }
 0x3a7   : > { %v1765_v36 = vmul.f32 1.442695, %v1758_v35  ;;  %v3764_v37 = vpop.eup %2927 }
 0x3a8   : > { %v869_v15 = vpop.permute.xlu0 %868  ;;  %v1767_v38 = vsel %vm1738_vm4, %v3764_v37, 0.0  ;;  %v3769_v39 = vpop.eup %2929 }
 0x3a9   : > { %2931 = vpow2.f32 %v1765_v36  ;;  %884 = vrot.lane.b32.xlu1 %v869_v15, %s3234_s0  ;;  %1768 = vadd.xlane.f32.xlu0 %v1767_v38  ;;  %v1770_v41 = vsel %vm1738_vm4, %v3769_v39, 0.0  ;;  %v877_v51 = vpop.permute.xlu1 %876 }
 0x3aa   : > { %2933 = vpow2.f32 %v1763_v46 }
 0x3ad   : > { %886 = vrot.lane.b32.xlu1 %v871_v40, %s3234_s0  ;;  %1771 = vadd.xlane.f32.xlu0 %v1770_v41  ;;  %v879_v52 = vpop.permute.xlu1 %878 }
 0x3b1   : > { %v881_v53 = vpop.permute.xlu1 %880 }
 0x3b2   : > { %v896_v56 = vcombine.low %v873_v49, %v881_v53  ;;  %v897_v57 = vcombine.high %v873_v49, %v881_v53 }
 0x3b3   : > { %v3774_v42 = vpop.eup %2931 }
 0x3b4   : > { %v1776_v44 = vsel %vm1738_vm4, %v3774_v42, 0.0  ;;  %v3778_v47 = vpop.eup %2933  ;;  %v904_v61 = vrot.slane %v896_v56, %v3625_v43  ;;  %v911_v62 = vrot.slane %v897_v57, %v3625_v43 }
 0x3b5   : > { %1777 = vadd.xlane.f32.xlu0 %v1776_v44  ;;  %v1773_v48 = vsel %vm1738_vm4, %v3778_v47, 0.0  ;;  %v883_v54 = vpop.permute.xlu1 %882 }
 0x3b6   : > { %v964_v3 = vcombine.low %v875_v50, %v883_v54  ;;  %v965_v4 = vcombine.high %v875_v50, %v883_v54 }
 0x3b8   : > { %v972_v17 = vrot.slane %v964_v3, %v3625_v43  ;;  %v979_v19 = vrot.slane %v965_v4, %v3625_v43 }
 0x3d1   : > { %1774 = vadd.xlane.f32.xlu1 %v1773_v48 }
 0x41b   : > { %v885_v58 = vpop.permute.xlu1 %884 }
 0x41c   : > { %v912_v59 = vcombine.low %v877_v51, %v885_v58  ;;  %v913_v60 = vcombine.high %v877_v51, %v885_v58 }
 0x41e   : > { %v920_v63 = vrot.slane %v912_v59, %v3625_v43  ;;  %v927_v2 = vrot.slane %v913_v60, %v3625_v43 }
 0x41f   : > { %v887_v5 = vpop.permute.xlu1 %886 }
 0x420   : > { %v928_v6 = vcombine.low %v904_v61, %v920_v63  ;;  %v929_v7 = vcombine.high %v904_v61, %v920_v63  ;;  %v944_v8 = vcombine.low %v911_v62, %v927_v2  ;;  %v945_v9 = vcombine.high %v911_v62, %v927_v2 }
 0x421   : > { %v980_v11 = vcombine.low %v879_v52, %v887_v5  ;;  %v981_v12 = vcombine.high %v879_v52, %v887_v5 }
 0x422   : > { %v936_v31 = vrot.slane %v928_v6, %v3628_v55  ;;  %v943_v23 = vrot.slane %v929_v7, %v3628_v55  ;;  %v952_v13 = vrot.slane %v944_v8, %v3628_v55  ;;  %v959_v14 = vrot.slane %v945_v9, %v3628_v55 }
 0x423   : > { %v988_v21 = vrot.slane %v980_v11, %v3625_v43  ;;  %v995_v22 = vrot.slane %v981_v12, %v3625_v43 }
 0x424   : > { %v1032_v24 = vcombine.low %v936_v31, %v943_v23  ;;  %v2595_v26 = vcombine.high %v936_v31, %v943_v23  ;;  %v1048_v27 = vcombine.low %v952_v13, %v959_v14  ;;  %v2596_v28 = vcombine.high %v952_v13, %v959_v14 }
 0x425   : > { %v996_v29 = vcombine.low %v972_v17, %v988_v21  ;;  %v997_v30 = vcombine.high %v972_v17, %v988_v21  ;;  %v1012_v32 = vcombine.low %v979_v19, %v995_v22  ;;  %v1013_v25 = vcombine.high %v979_v19, %v995_v22 }
 0x426   : > { %v1039_v10 = vrot.slane %v1032_v24, %v3625_v43  ;;  %v1047_v33 = vrot.slane %v2595_v26, %v3625_v43  ;;  %v1055_v34 = vrot.slane %v1048_v27, %v3625_v43  ;;  %v1063_v35 = vrot.slane %v2596_v28, %v3625_v43 }
 0x427   : > { %v1004_v36 = vrot.slane %v996_v29, %v3628_v55  ;;  %v1011_v15 = vrot.slane %v997_v30, %v3628_v55  ;;  %v1020_v38 = vrot.slane %v1012_v32, %v3628_v55  ;;  %v1027_v40 = vrot.slane %v1013_v25, %v3628_v55 }
 0x428   : > { %v1064_v41 = vcombine.low %v1039_v10, %v1047_v33  ;;  %v1065_v44 = vcombine.high %v1039_v10, %v1047_v33  ;;  %v1080_v45 = vcombine.low %v1055_v34, %v1063_v35  ;;  %v1081_v46 = vcombine.high %v1055_v34, %v1063_v35 }
 0x429   : > { %v1100_v48 = vcombine.low %v1004_v36, %v1011_v15  ;;  %v2597_v49 = vcombine.high %v1004_v36, %v1011_v15  ;;  %v1116_v50 = vcombine.low %v1020_v38, %v1027_v40  ;;  %v2598_v51 = vcombine.high %v1020_v38, %v1027_v40 }
 0x42a   : > { %v1072_v52 = vrot.slane %v1064_v41, %v3628_v55  ;;  %v1079_v53 = vrot.slane %v1065_v44, %v3628_v55  ;;  %v1088_v54 = vrot.slane %v1080_v45, %v3628_v55  ;;  %v1095_v56 = vrot.slane %v1081_v46, %v3628_v55 }
 0x42b   : > { %v1107_v57 = vrot.slane %v1100_v48, %v3625_v43  ;;  %v1115_v58 = vrot.slane %v2597_v49, %v3625_v43  ;;  %v1123_v59 = vrot.slane %v1116_v50, %v3625_v43  ;;  %v1131_v60 = vrot.slane %v2598_v51, %v3625_v43 }
 0x42c   : > { %v1096_v61 = vcombine.low %v1072_v52, %v1088_v54  ;;  %v1097_v62 = vcombine.high %v1072_v52, %v1088_v54  ;;  %v1098_v63 = vcombine.low %v1079_v53, %v1095_v56  ;;  %v1099_v2 = vcombine.high %v1079_v53, %v1095_v56 }
 0x42d   : > { %v1132_v3 = vcombine.low %v1107_v57, %v1115_v58  ;;  %v1133_v4 = vcombine.high %v1107_v57, %v1115_v58  ;;  %v1148_v5 = vcombine.low %v1123_v59, %v1131_v60  ;;  %v1149_v6 = vcombine.high %v1123_v59, %v1131_v60 }
 0x42e   : > { %1168 = vst.msk [vmem:[#allocation3] sm:$0xff] %vm849_vm2, %v1096_v61  ;;  %1170 = vst.msk [vmem:[#allocation3 + $0x10] sm:$0xff] %vm849_vm2, %v1097_v62 }
 0x42f   : > { %1172 = vst.msk [vmem:[#allocation3 + $0x20] sm:$0xff] %vm849_vm2, %v1098_v63  ;;  %1174 = vst.msk [vmem:[#allocation3 + $0x30] sm:$0xff] %vm849_vm2, %v1099_v2  ;;  %v1140_v7 = vrot.slane %v1132_v3, %v3628_v55  ;;  %v1147_v8 = vrot.slane %v1133_v4, %v3628_v55  ;;  %v1156_v9 = vrot.slane %v1148_v5, %v3628_v55 }
 0x430   : > { %v1163_v11 = vrot.slane %v1149_v6, %v3628_v55 }
 0x431   : > { %v1164_v12 = vcombine.low %v1140_v7, %v1156_v9  ;;  %v1165_v31 = vcombine.high %v1140_v7, %v1156_v9 }
 0x432   : > { %v1166_v23 = vcombine.low %v1147_v8, %v1163_v11  ;;  %v1167_v13 = vcombine.high %v1147_v8, %v1163_v11 }
 0x433   : > { %1169 = vst.msk [vmem:[#allocation3 + $0x8] sm:$0xff] %vm849_vm2, %v1164_v12  ;;  %1171 = vst.msk [vmem:[#allocation3 + $0x18] sm:$0xff] %vm849_vm2, %v1165_v31 }
 0x434   : > { %1173 = vst.msk [vmem:[#allocation3 + $0x28] sm:$0xff] %vm849_vm2, %v1166_v23  ;;  %1175 = vst.msk [vmem:[#allocation3 + $0x38] sm:$0xff] %vm849_vm2, %v1167_v13  ;;  %v2251_v23 = vld [vmem:[#allocation12] sm:$0xff]  ;;  %v2252_v13 = vld [vmem:[#allocation12 + $0x8] sm:$0xff] }
 0x435   : > { %v1799_v17 = vld [vmem:[#allocation3] sm:$0xff]  ;;  %v1801_v15 = vld [vmem:[#allocation3 + $0x10] sm:$0xff] }
 0x436   : > { %v1769_v14 = vpop.xlane.xlu0 %1768  ;;  %v1803_v21 = vld [vmem:[#allocation3 + $0x20] sm:$0xff]  ;;  %v1805_v46 = vld [vmem:[#allocation3 + $0x30] sm:$0xff] }
 0x437   : > { %2935 = vrcp.f32 %v1769_v14 }
 0x43a   : > { %v1800_v19 = vld [vmem:[#allocation3 + $0x8] sm:$0xff]  ;;  %v1772_v24 = vpop.xlane.xlu0 %1771  ;;  %v1802_v34 = vld [vmem:[#allocation3 + $0x18] sm:$0xff] }
 0x43b   : > { %v1804_v22 = vld [vmem:[#allocation3 + $0x28] sm:$0xff]  ;;  %v2791_v26 = vpack.c.bf16 %v1800_v19, %v1799_v17  ;;  %2937 = vrcp.f32 %v1772_v24  ;;  %v2794_v38 = vpack.c.bf16 %v1802_v34, %v1801_v15  ;;  %v1806_v41 = vld [vmem:[#allocation3 + $0x38] sm:$0xff] }
 0x43c   : > { %v2797_v27 = vpack.c.bf16 %v1804_v22, %v1803_v21  ;;  %v2800_v49 = vpack.c.bf16 %v1806_v41, %v1805_v46  ;;  %v2803_v22 = vpack.c.bf16 %v2252_v13, %v2251_v23 }
 0x43d   : > { %2792 = vmatpush3.bf16.msra.mxu1 %v2791_v26 }
 0x43e   : > { %2798 = vmatpush3.bf16.msra.mxu0 %v2797_v27  ;;  %2793 = vmatprep.subr.bf16.mxu1 %v3225_v0 }
 0x43f   : > { %2802 = vmatprep.subr.bf16.mxu0 %v3225_v0 }
 0x441   : > { %v2936_v28 = vpop.eup %2935 }
 0x442   : > { %v1778_v29 = vpop.xlane.xlu0 %1777  ;;  %v1783_v30 = vmul.f32 %v2936_v28, %v1769_v14 }
 0x443   : > { %2939 = vrcp.f32 %v1778_v29 }
 0x444   : > { %v1787_v32 = vsub.f32 2.0, %v1783_v30  ;;  %v2254_v30 = vld [vmem:[#allocation12 + $0x18] sm:$0xff] }
 0x445   : > { %v2938_v25 = vpop.eup %2937 }
 0x446   : > { %v1791_v10 = vmul.f32 %v2936_v28, %v1787_v32  ;;  %v1784_v33 = vmul.f32 %v2938_v25, %v1772_v24 }
 0x448   : > { %v1795_v35 = vmul.f32 %v3764_v37, %v1791_v10  ;;  %v1788_v36 = vsub.f32 2.0, %v1784_v33 }
 0x44a   : > { %v1792_v40 = vmul.f32 %v2938_v25, %v1788_v36  ;;  %2726 = vmatmul.mubr.msk.f32.vlgmr.msra.gmra.mrb[6].mxu1 %vm1738_vm4, %v1795_v35 }
 0x44b   : > { %2795 = vmatpush3.bf16.msra.mxu1 %v2794_v38  ;;  %2732 = vmatprep.mubr.msk.f32.mxu1 %vm3226_vm0, %v3227_v1 }
 0x44c   : > { %v1796_v45 = vmul.f32 %v3769_v39, %v1792_v40  ;;  %2799 = vmatprep.subr.bf16.mxu1 %v3225_v0 }
 0x44d   : > { %v2940_v44 = vpop.eup %2939 }
 0x44e   : > { %v1786_v48 = vmul.f32 %v2940_v44, %v1778_v29  ;;  %2733 = vmatmul.mubr.msk.f32.vlgmr.msra.gmra.mrb[8].mxu1 %vm1738_vm4, %v1796_v45  ;;  %v2253_v29 = vld [vmem:[#allocation12 + $0x10] sm:$0xff] }
 0x44f   : > { %2801 = vmatpush3.bf16.msra.mxu1 %v2800_v49  ;;  %2746 = vmatprep.mubr.msk.f32.mxu1 %vm3226_vm0, %v3227_v1  ;;  %v2806_v34 = vpack.c.bf16 %v2254_v30, %v2253_v29 }
 0x450   : > { %v1790_v37 = vsub.f32 2.0, %v1786_v48 }
 0x452   : > { %v1794_v50 = vmul.f32 %v2940_v44, %v1790_v37 }
 0x454   : > { %v1798_v51 = vmul.f32 %v3774_v42, %v1794_v50 }
 0x456   : > { %2747 = vmatmul.mubr.msk.f32.vlgmr.msra.gmra.mrb[10].mxu1 %vm1738_vm4, %v1798_v51 }
 0x45e   : > { %v1775_v52 = vpop.xlane.xlu1 %1774 }
 0x45f   : > { %2941 = vrcp.f32 %v1775_v52 }
 0x469   : > { %v2942_v39 = vpop.eup %2941 }
 0x46a   : > { %v1785_v53 = vmul.f32 %v2942_v39, %v1775_v52 }
 0x46c   : > { %v1789_v54 = vsub.f32 2.0, %v1785_v53 }
 0x46e   : > { %v1793_v56 = vmul.f32 %v2942_v39, %v1789_v54  ;;  %v2257_v39 = vsub.s32 3, %v3591_v18 }
 0x470   : > { %v1797_v57 = vmul.f32 %v3778_v47, %v1793_v56  ;;  %v2258_v53 = vrot.slane %v3597_v20, %v2257_v39 }
 0x472   : > { %2740 = vmatmul.mubr.msk.f32.vlgmr.msra.gmra.mrb[6].mxu0 %vm1738_vm4, %v1797_v57 }
 0x473   : > { %2757 = vmatprep.mubr.msk.f32.mxu0 %vm3226_vm0, %v3227_v1  ;;  %2804 = vmatpush3.bf16.msra.mxu0 %v2803_v22 }
 0x474   : > { %2805 = vmatprep.subr.bf16.mxu0 %v3225_v0 }
 0x477   : > { %2807 = vmatpush3.bf16.msra.mxu0 %v2806_v34 }
 0x51d   : > { %v1876_v58 = vpop.f32.mrb[6].mxu1 }
 0x51e   : > { %v2727_v59 = vpop.f32.mrb[7].mxu1 }
 0x521   : > { %v1949_v60 = vpop.f32.mrb[8].mxu1 }
 0x522   : > { %v2734_v61 = vpop.f32.mrb[9].mxu1 }
 0x529   : > { %v2095_v42 = vpop.f32.mrb[10].mxu1 }
 0x52a   : > { %v2115_v62 = vcombine.low %v1949_v60, %v2095_v42  ;;  %v2116_v63 = vcombine.high %v1949_v60, %v2095_v42  ;;  %v2748_v2 = vpop.f32.mrb[11].mxu1 }
 0x52c   : > { %v2123_v7 = vrot.slane %v2115_v62, %v3625_v43  ;;  %v2130_v47 = vrot.slane %v2116_v63, %v3625_v43 }
 0x545   : > { %v2022_v3 = vpop.f32.mrb[6].mxu0 }
 0x546   : > { %v2099_v4 = vcombine.low %v1876_v58, %v2022_v3  ;;  %v2100_v5 = vcombine.high %v1876_v58, %v2022_v3  ;;  %v2741_v6 = vpop.f32.mrb[7].mxu0 }
 0x548   : > { %v2107_v8 = vrot.slane %v2099_v4, %v3625_v43  ;;  %v2114_v1 = vrot.slane %v2100_v5, %v3625_v43 }
 0x54a   : > { %v2131_v9 = vcombine.low %v2107_v8, %v2123_v7  ;;  %v2132_v11 = vcombine.high %v2107_v8, %v2123_v7  ;;  %v2147_v12 = vcombine.low %v2114_v1, %v2130_v47  ;;  %v2148_v31 = vcombine.high %v2114_v1, %v2130_v47 }
 0x54c   : > { %v2139_v14 = vrot.slane %v2131_v9, %v3628_v55  ;;  %v2146_v17 = vrot.slane %v2132_v11, %v3628_v55  ;;  %v2155_v19 = vrot.slane %v2147_v12, %v3628_v55  ;;  %v2162_v21 = vrot.slane %v2148_v31, %v3628_v55 }
 0x54e   : > { %v2167_v24 = vcombine.low %v2139_v14, %v2146_v17  ;;  %v2619_v26 = vcombine.high %v2139_v14, %v2146_v17  ;;  %v2183_v27 = vcombine.low %v2155_v19, %v2162_v21  ;;  %v2620_v28 = vcombine.high %v2155_v19, %v2162_v21 }
 0x550   : > { %v2174_v32 = vrot.slane %v2167_v24, %v3625_v43  ;;  %v2182_v25 = vrot.slane %v2619_v26, %v3625_v43  ;;  %v2190_v10 = vrot.slane %v2183_v27, %v3625_v43  ;;  %v2198_v33 = vrot.slane %v2620_v28, %v3625_v43 }
 0x552   : > { %v2199_v35 = vcombine.low %v2174_v32, %v2182_v25  ;;  %v2215_v36 = vcombine.low %v2190_v10, %v2198_v33  ;;  %v2200_v15 = vcombine.high %v2174_v32, %v2182_v25  ;;  %v2216_v38 = vcombine.high %v2190_v10, %v2198_v33 }
 0x554   : > { %v2207_v40 = vrot.slane %v2199_v35, %v3628_v55  ;;  %v2223_v41 = vrot.slane %v2215_v36, %v3628_v55  ;;  %v2214_v44 = vrot.slane %v2200_v15, %v3628_v55  ;;  %v2230_v45 = vrot.slane %v2216_v38, %v3628_v55 }
 0x556   : > { %v2232_v46 = vcombine.high %v2207_v40, %v2223_v41  ;;  %v2233_v48 = vcombine.low %v2214_v44, %v2230_v45  ;;  %v2234_v49 = vcombine.high %v2214_v44, %v2230_v45  ;;  %v2231_v43 = vcombine.low %v2207_v40, %v2223_v41 }
 0x558   : > { %2236 = vrot.lane.b32.xlu0 %v2232_v46, %s3235_s15 }
 0x55c   : > { %2240 = vrot.lane.b32.xlu0 %v2233_v48, %s3236_s26 }
 0x560   : > { %2244 = vrot.lane.b32.xlu0 %v2234_v49, %s3237_s24 }
 0x5ca   : > { %v2237_v0 = vpop.permute.xlu0 %2236 }
 0x5cb   : > { %v2247_v50 = vsel %vm849_vm2, %v2231_v43, %v2237_v0 }
 0x5ce   : > { %v2241_v37 = vpop.permute.xlu0 %2240 }
 0x5cf   : > { %v2248_v51 = vsel %vm1738_vm4, %v2247_v50, %v2241_v37 }
 0x5d2   : > { %v2245_v52 = vpop.permute.xlu0 %2244 }
 0x5d3   : > { %v2250_v55 = vsel %vm2249_vm5, %v2248_v51, %v2245_v52 }
 0x5d4   : > { %2758 = vmatmul.mubr.msk.f32.vlgmr.msra.gmra.mrb[8].mxu0 %vm459_vm1, %v2250_v55 }
 0x6a7   : > { %v2328_v54 = vpop.f32.mrb[8].mxu0 }
 0x6a8   : > { %v2329_v56 = vadd.f32 %v2328_v54, %v2258_v53  ;;  %v2759_v57 = vpop.f32.mrb[9].mxu0 }
 0x6aa   : > { %v2332_v58 = vadd.f32 %v2329_v56, %v3580_v16 }
 0x6ac   : > { %v2333_v59 = vsel %vm459_vm1, %v2332_v58, 0.0 }
 0x6ad   : > { %2334 = vadd.xlane.f32.xlu1 %v2333_v59 }
 0x73a   : > { %v2335_v60 = vpop.xlane.xlu1 %2334 }
 0x73b   : > { %v2337_v61 = vmul.f32 0.03125, %v2335_v60 }
 0x73d   : > { %v2338_v42 = vsub.f32 %v2332_v58, %v2337_v61 }
 0x73f   : > { %v2339_v62 = vmul.f32 %v2338_v42, %v2338_v42 }
 0x741   : > { %v2340_v63 = vsel %vm459_vm1, %v2339_v62, 0.0 }
 0x742   : > { %2341 = vadd.xlane.f32.xlu0 %v2340_v63 }
 0x743   : > { %3103 = shalt.err (!%p3100_p12)
}
 0x744   : > { %s3104_s7 = scalar_lea.hbm %s3872_s17, 512  ;;  %s3108_s24 = scalar_lea.hbm %s4006_s25, 1024 }
 0x745   : > { %p3105_p6 = scmp.ne.s32.totalorder %s3872_s17, %s3104_s7  ;;  %p3109_p0 = scmp.lt.u32.totalorder %s3872_s17, %s4006_s25 }
 0x746   : > { %p3110_p2 = scmp.lt.u32.totalorder %s3108_s24, %s3104_s7  ;;  %p3112_p8 = scmp.lt.u32.totalorder %s3104_s7, %s3872_s17 }
 0x747   : > { %p3106_p7 = pnand %p3105_p6, %p3442_p10 }
 0x748   : > { %p3111_p4 = por %p3110_p2, %p3109_p0 }
 0x749   : > { %p3107_p9 = pneg %p3106_p7 }
 0x74a   : > { %p3113_p1 = por %p3112_p8, %p3111_p4 }
 0x74c   : > { %p3114_p13 = pnand %p3113_p1, %p3107_p9 }
 0x74e   : > { %3117 = shalt.err (!%p3114_p13)
}
 0x74f   : > { %s3239_s19 = smov 128   ;;  %v2349_v4 = vsub.s32 4, %v3591_v18  ;;  %v2354_v5 = vsub.s32 5, %v3591_v18  ;;  %v2945_v8 = vld [vmem:[%s3967_s6] sm:$0xff]  ;;  %s4007_s20 = sld [smem:[#allocation26_spill]] }
 0x750   : > { %2825 = dma.vmem_to_hbm [thread:$0]  (%p3442_p10), %s3866_s11, 512, %s3872_s17, %s2364_s14, %s3239_s19, %s3239_s19, %s3235_s15  }
 0x751   : > { %v2350_v6 = vrot.slane %v3597_v20, %v2349_v4  ;;  %v2355_v1 = vrot.slane %v2945_v8, %v2354_v5  ;;  %s2624_s15 = sshll.u32 %s3208_s30, 7  ;;  %s437_s11 = scalar_lea.vmem [#allocation13], %s2582_s23 }
 0x752   : > { %s2378_s17 = sshll.u32 %s437_s11, 4  ;;  %s2359_s0 = scalar_lea.sflag [#allocation6], %s3544_s27  ;;  %s3913_s17 = int_to_ptr.vmem [resolvable:$true] %s2378_s17 }
 0x753   : > { %s3118_s26 = scalar_lea.vmem %s3913_s17, 128  ;;  %s3240_s30 = smov [#allocation13]  }
 0x754   : > { %p3119_p3 = scmp.ne.s32.totalorder %s3913_s17, %s3118_s26  ;;  %s3122_s23 = sshll.u32 %s3240_s30, 4  ;;  %s3123_s23 = int_to_ptr.vmem [resolvable:$false] %s3122_s23 }
 0x755   : > { %s3911_s7 = scalar_lea.hbm %s4007_s20, %s2624_s15  ;;  %s3124_s24 = scalar_lea.vmem %s3123_s23, 256 }
 0x756   : > { %p3120_p5 = pnand %p3119_p3, %p3442_p10  ;;  %p3125_p12 = scmp.lt.s32.totalorder %s3913_s17, %s3123_s23 }
 0x757   : > { %p3126_p6 = scmp.lt.s32.totalorder %s3124_s24, %s3118_s26 }
 0x758   : > { %p3121_p11 = pneg %p3120_p5 }
 0x759   : > { %p3127_p7 = por %p3126_p6, %p3125_p12 }
 0x75b   : > { %p3128_p9 = pnand %p3127_p7, %p3121_p11 }
 0x7cf   : > { %v2342_v16 = vpop.xlane.xlu0 %2341 }
 0x7d0   : > { %v2343_v2 = vmul.f32 0.03125, %v2342_v16 }
 0x7d2   : > { %v2344_v3 = vadd.f32 1e-12, %v2343_v2 }
 0x7d4   : > { %2943 = vrsqrt.f32 %v2344_v3 }
 0x7de   : > { %v2944_v7 = vpop.eup %2943 }
 0x7df   : > { %v2346_v47 = vmul.f32 %v2944_v7, %v2338_v42 }
 0x7e1   : > { %v2351_v9 = vmul.f32 %v2350_v6, %v2346_v47 }
 0x7e3   : > { %v2356_v11 = vadd.f32 %v2355_v1, %v2351_v9 }
 0x7e5   : > { %2357 = vst.msk [vmem:[%s437_s11] sm:$0xff] %vm459_vm1, %v2356_v11 }
 0x7e6   : > { %3131 = shalt.err (!%p3128_p9)
}
 0x7e7   : > { %s3132_s27 = scalar_lea.hbm %s3911_s7, 128  ;;  %s3136_s19 = scalar_lea.hbm %s4007_s20, 256 }
 0x7e8   : > { %p3133_p0 = scmp.ne.s32.totalorder %s3911_s7, %s3132_s27  ;;  %p3137_p8 = scmp.lt.u32.totalorder %s3911_s7, %s4007_s20 }
 0x7e9   : > { %p3138_p1 = scmp.lt.u32.totalorder %s3136_s19, %s3132_s27  ;;  %p3140_p3 = scmp.lt.u32.totalorder %s3132_s27, %s3911_s7 }
 0x7ea   : > { %p3134_p2 = pnand %p3133_p0, %p3442_p10 }
 0x7eb   : > { %p3139_p13 = por %p3138_p1, %p3137_p8 }
 0x7ec   : > { %p3135_p4 = pneg %p3134_p2 }
 0x7ed   : > { %p3141_p5 = por %p3140_p3, %p3139_p13 }
 0x7ef   : > { %p3142_p11 = pnand %p3141_p5, %p3135_p4 }
 0x7f1   : > { %3145 = shalt.err (!%p3142_p11)
}
 0x7f2   : > { %2824 = dma.vmem_to_hbm [thread:$0]  (%p3442_p10), %s3913_s17, 128, %s3911_s7, %s2359_s0  }
 0x7f3 PF: > { %s4008_s15 = sld [smem:[#allocation22_spill]]  ;;  %s4009_s11 = sld [smem:[#allocation23_spill]] }
 0x7f4   : > { %p4011_p6 = scmp.ge.s32.totalorder %s3216_s10, 2 }
 0x7f9   : > { %s2407_s14 = sand.u32 1, %s4008_s15   ;;  %p4010_p12 = scmp.ne.s32.totalorder %s4009_s11, 0 }
 0x7fa   : > { %s2408_s21 = scalar_lea.sflag [#allocation6], %s2407_s14 }
 0x7fb   : > { %p2846_p7 = pnand %p4011_p6, %p4010_p12 }
 0x7fd   : > { %3187 = dma.done.wait (!%p2846_p7), %s2408_s21, 128  }
 0x7fe   : > { %3189 = vsyncadd (!%p2846_p7), %s2408_s21, 4294967168  ;;  %s2417_s26 = scalar_lea.sflag [#allocation15], %s2407_s14 }
 0x7ff   : > { %3191 = dma.done.wait (!%p2846_p7), %s2417_s26, 512  }
 0x800   : > { %3193 = vsyncadd (!%p2846_p7), %s2417_s26, 4294966784  ;;  %s32_s10 = sadd.s32 1, %s3216_s10   ;;  %s4012_s27 = smov %s3200_s28 }
 0x801   : > { %p29_p9 = scmp.ge.s32.totalorder %s32_s10, 4   ;;  %s4013_s28 = smov %s3204_s29 }
 0x802   : > { %s4014_s29 = smov %s3457_s12  ;;  %s4015_s30 = smov %s3212_s9 }
 0x803   : > { %s4016_s9 = smov %s4018_s18  ;;  %31 = sbr.rel (!%p29_p9) target bundleno = 16 (0x10), region = 142 }
 0x80a   :  { %2422 = vsyncpa [#allocation5], 1 }
 0x80b   :  { %2424 = vsyncpa [#allocation5 + $0x1], 1 }
 0x80c   :  { %2425 = vsyncpa [#allocation8], 1 }
 0x80d   :  { %2427 = vsyncpa [#allocation8 + $0x1], 1 }
 0x80e   :  { %2428 = vsyncpa [#allocation11], 1 }
 0x80f   :  { %2429 = vsyncpa [#allocation6], 1 }
 0x810   :  { %2431 = vsyncpa [#allocation6 + $0x1], 1 }
 0x811   :  { %2432 = vsyncpa [#allocation15], 1 }
 0x812   :  { %2434 = vsyncpa [#allocation15 + $0x1], 1 }

</bundles_post_ra>
